<compile_context>
chip_gen: v6e
topology: v6e:2x2x1
jax: 0.10.0
libtpu: 0.0.40
codegen_flags: <defaults>
</compile_context>

<pallas_src>
import functools

import jax
import jax.numpy as jnp
from jax.experimental import pallas as pl
from jax.experimental.pallas import tpu as pltpu


def fastformer_kernel(*refs, num_heads, fuse_qkv, fold_to_r, ew_bf16):
    it = iter(refs)
    x_ref = next(it)
    if fuse_qkv:
        wqkv_ref = next(it)
    else:
        wq_ref, wk_ref, wv_ref = next(it), next(it), next(it)
    wq_proj_ref = next(it)
    wk_proj_ref = next(it)
    expand_ref = next(it)
    if fold_to_r:
        w_ur_ref, wout_ref, b_fold_ref = next(it), next(it), next(it)
    else:
        wr_bd_ref, br_ref, wout_ref, bout_ref = next(it), next(it), next(it), next(it)
    o_ref = next(it)

    tb, n, d_model = x_ref.shape          # batch tile, seq, model dim
    inner = wq_proj_ref.shape[0]          # num_heads * head_dim
    ew = jnp.bfloat16 if ew_bf16 else jnp.float32

    # ---- qkv projection: one fused big-M matmul (rows = tb*n) ----
    x2 = x_ref[...].reshape(tb * n, d_model)                               # bf16
    if fuse_qkv:
        qkv2 = jnp.dot(x2, wqkv_ref[...], preferred_element_type=jnp.float32)
        q2 = qkv2[:, :inner]                                               # lane-aligned slices
        k2 = qkv2[:, inner:2 * inner]
        v2 = qkv2[:, 2 * inner:]
    else:
        q2 = jnp.dot(x2, wq_ref[...], preferred_element_type=jnp.float32)
        k2 = jnp.dot(x2, wk_ref[...], preferred_element_type=jnp.float32)
        v2 = jnp.dot(x2, wv_ref[...], preferred_element_type=jnp.float32)

    q2b = q2.astype(jnp.bfloat16)         # reused for q-logits and (fold path) q @ Wout

    def seq_softmax(l3):                  # (tb, n, H), softmax over seq axis
        m = jnp.max(l3, axis=1, keepdims=True)
        e = jnp.exp(l3 - m)
        s = jnp.sum(e, axis=1, keepdims=True)
        return e * pl.reciprocal(s, approx=True)

    expand = expand_ref[...]              # (H, inner) 0/1 matrix, kept f32 => exact

    # ---- query attention -> global query (all heads at once) ----
    # wq_proj is block-structured (inner, H) with the 1/sqrt(d) scale folded in.
    q_logits = jnp.dot(q2b, wq_proj_ref[...], preferred_element_type=jnp.float32)
    q_attn = seq_softmax(q_logits.reshape(tb, n, num_heads))               # (tb, n, H)
    q_attn_e = jnp.dot(q_attn.reshape(tb * n, num_heads), expand,
                       preferred_element_type=jnp.float32)                 # (tb*n, inner)
    q3 = q2.reshape(tb, n, inner)
    global_q = jnp.sum(q_attn_e.reshape(tb, n, inner) * q3,
                       axis=1, keepdims=True)                              # (tb, 1, inner) f32

    # ---- key attention on k * global_q; aggregate over the ORIGINAL k ----
    k3 = k2.astype(ew).reshape(tb, n, inner)
    k_mod = k3 * global_q.astype(ew)
    k_logits = jnp.dot(k_mod.reshape(tb * n, inner).astype(jnp.bfloat16),
                       wk_proj_ref[...], preferred_element_type=jnp.float32)
    k_attn = seq_softmax(k_logits.reshape(tb, n, num_heads))
    k_attn_e = jnp.dot(k_attn.reshape(tb * n, num_heads), expand,
                       preferred_element_type=jnp.float32)
    global_k = jnp.sum(k_attn_e.reshape(tb, n, inner) * k3.astype(jnp.float32),
                       axis=1, keepdims=True)                              # (tb, 1, inner) f32

    # ---- value modulation ----
    v3 = v2.astype(ew).reshape(tb, n, inner)
    u2 = (v3 * global_k.astype(ew)).reshape(tb * n, inner).astype(jnp.bfloat16)

    # ---- to_r + query residual + output projection ----
    if fold_to_r:
        # (u @ Wr_bd + br + q) @ Wout + bout == u @ (Wr_bd@Wout) + q @ Wout + (br@Wout + bout)
        out = (jnp.dot(u2, w_ur_ref[...], preferred_element_type=jnp.float32)
               + jnp.dot(q2b, wout_ref[...], preferred_element_type=jnp.float32)
               + b_fold_ref[...])
    else:
        r = jnp.dot(u2, wr_bd_ref[...], preferred_element_type=jnp.float32)
        r = r + br_ref[...] + q2
        out = jnp.dot(r.astype(jnp.bfloat16), wout_ref[...],
                      preferred_element_type=jnp.float32) + bout_ref[...]

    o_ref[...] = out.reshape(tb, n, d_model).astype(o_ref.dtype)


def _tpu_generation():
    try:
        kind = jax.devices()[0].device_kind.lower()
    except Exception:
        return 6
    for g in (7, 6, 5, 4, 3):
        if f"v{g}" in kind:
            return g
    return 6


def fastformer_forward(x, params, *, num_heads, head_dim, block_b=None):
    B, N, D = x.shape
    inner = num_heads * head_dim
    scale = head_dim ** (-0.5)

    gen = _tpu_generation()
    ew_bf16 = gen >= 6                    # packed-bf16 VALU only on v6e/v7x
    fuse_qkv = (inner % 128) == 0         # lane-aligned q/k/v slices of the fused matmul
    fold_to_r = D <= inner                # folding to_r into Wout saves MACs iff D <= inner
    if gen >= 7:
        vmem_limit = 48 * 1024 * 1024     # v7x: 64 MiB/TC physical
    elif gen >= 5:
        vmem_limit = 100 * 1024 * 1024    # v5e/v6e: 128 MiB physical
    else:
        vmem_limit = None

    # ---- batch-tile selection (rows/step targets MXU width; >=2 grid steps for v7x) ----
    if block_b is None:
        target_rows = 256 if gen <= 5 else 512
        block_b = max(1, target_rows // max(N, 1))
        block_b = min(block_b, B)
        if B >= 2:
            block_b = min(block_b, (B + 1) // 2)
        ew_bytes = 2 if ew_bf16 else 4
        row_bytes = 3 * inner * 4 + inner * 2 + 4 * inner * ew_bytes + 6 * D
        budget = int((vmem_limit or 32 * 1024 * 1024) * 0.4)
        while block_b > 1 and block_b * N * row_bytes > budget:
            block_b -= 1
    block_b = max(1, min(block_b, B))

    n_blocks = pl.cdiv(B, block_b)
    B_pad = n_blocks * block_b
    x_p = x if B_pad == B else jnp.concatenate(
        [x, jnp.zeros((B_pad - B, N, D), x.dtype)], axis=0)

    # ---- host-side weight restructuring (cheap; constant-folded under jit) ----
    wqkv = params["wqkv"]                                    # (D, 3*inner), pre-transposed
    eye = jnp.eye(num_heads, dtype=jnp.float32)
    # (inner, H): column h carries wq_attn over rows [h*d,(h+1)*d); scale folded in.
    wq_proj = jnp.kron(eye, params["wq_attn"].reshape(head_dim, 1)) * scale
    wk_proj = jnp.kron(eye, params["wk_attn"].reshape(head_dim, 1)) * scale
    # (H, inner): row h is ones on lanes [h*d,(h+1)*d) — expands (.., H) attn to (.., inner).
    expand = jnp.kron(eye, jnp.ones((1, head_dim), jnp.float32))
    wr_bd = jnp.kron(eye, params["wr"])                      # (inner, inner) block-diagonal
    br_tiled = jnp.tile(params["br"], (1, num_heads))        # (1, inner)
    wout = params["wout"]                                    # (inner, D), pre-transposed
    bout = params["bout"]                                    # (1, D)

    bf16 = lambda a: a.astype(jnp.bfloat16)
    f32 = lambda a: a.astype(jnp.float32)

    def run(weight_mode):
        def wspec(shape):
            nd = len(shape)
            imap = lambda b: (0,) * nd
            if weight_mode is None:
                return pl.BlockSpec(shape, imap)
            return pl.BlockSpec(shape, imap, pipeline_mode=weight_mode)

        inputs = [bf16(x_p)]
        in_specs = [pl.BlockSpec((block_b, N, D), lambda b: (b, 0, 0))]
        if fuse_qkv:
            inputs += [bf16(wqkv)]
            in_specs += [wspec((D, 3 * inner))]
        else:
            inputs += [bf16(wqkv[:, :inner]), bf16(wqkv[:, inner:2 * inner]),
                       bf16(wqkv[:, 2 * inner:])]
            in_specs += [wspec((D, inner))] * 3
        inputs += [bf16(wq_proj), bf16(wk_proj), f32(expand)]
        in_specs += [wspec((inner, num_heads)), wspec((inner, num_heads)),
                     wspec((num_heads, inner))]
        if fold_to_r:
            w_ur = wr_bd @ wout                              # (inner, D)
            b_fold = br_tiled @ wout + bout                  # (1, D)
            inputs += [bf16(w_ur), bf16(wout), f32(b_fold)]
            in_specs += [wspec((inner, D)), wspec((inner, D)), wspec((1, D))]
        else:
            inputs += [bf16(wr_bd), f32(br_tiled), bf16(wout), f32(bout)]
            in_specs += [wspec((inner, inner)), wspec((1, inner)),
                         wspec((inner, D)), wspec((1, D))]

        kernel = functools.partial(
            fastformer_kernel, num_heads=num_heads, fuse_qkv=fuse_qkv,
            fold_to_r=fold_to_r, ew_bf16=ew_bf16)

        return pl.pallas_call(
            kernel,
            out_shape=jax.ShapeDtypeStruct((B_pad, N, D), x.dtype),
            grid_spec=pltpu.PrefetchScalarGridSpec(
                num_scalar_prefetch=0,
                grid=(n_blocks,),
                in_specs=in_specs,
                out_specs=pl.BlockSpec((block_b, N, D), lambda b: (b, 0, 0)),
            ),
            compiler_params=pltpu.CompilerParams(
                dimension_semantics=("parallel",),
                vmem_limit_bytes=vmem_limit),
        )(*inputs)

    # Single-buffer grid-invariant weights (halves their VMEM footprint); fall
    # back to default double-buffering if this JAX build rejects Buffered(1).
    try:
        out = run(pl.Buffered(1))
    except Exception:
        out = run(None)

    return out[:B] if B_pad != B else out


def fastformer_reference(x, params, *, num_heads, head_dim):
    """Pure-JAX reference mirroring the PyTorch module (mask=None, no rotary)."""
    B, N, D = x.shape
    inner = num_heads * head_dim
    scale = head_dim ** (-0.5)

    qkv = x @ params["wqkv"]                                 # (B, N, 3*inner)
    q, k, v = jnp.split(qkv, 3, axis=-1)
    rs = lambda t: t.reshape(B, N, num_heads, head_dim).transpose(0, 2, 1, 3)
    q, k, v = rs(q), rs(k), rs(v)                            # (B, H, N, d)

    q_logits = jnp.einsum("bhnd,d->bhn", q, params["wq_attn"][0]) * scale
    q_attn = jax.nn.softmax(q_logits, axis=-1)
    global_q = jnp.einsum("bhn,bhnd->bhd", q_attn, q)[:, :, None, :]

    k_mod = k * global_q
    k_logits = jnp.einsum("bhnd,d->bhn", k_mod, params["wk_attn"][0]) * scale
    k_attn = jax.nn.softmax(k_logits, axis=-1)
    global_k = jnp.einsum("bhn,bhnd->bhd", k_attn, k)[:, :, None, :]

    u = v * global_k
    r = u @ params["wr"] + params["br"][0] + q               # (B, H, N, d)
    r = r.transpose(0, 2, 1, 3).reshape(B, N, inner)
    return r @ params["wout"] + params["bout"][0]


def init_params(key, input_dim, num_heads, head_dim):
    inner = num_heads * head_dim
    ks = jax.random.split(key, 7)
    u = lambda k, shape, fan_in: jax.random.uniform(
        k, shape, jnp.float32, -1.0 / (fan_in ** 0.5), 1.0 / (fan_in ** 0.5))
    return {
        # stored pre-transposed: kernel computes x @ W
        "wqkv": u(ks[0], (input_dim, 3 * inner), input_dim),
        "wq_attn": u(ks[1], (1, head_dim), head_dim),
        "wk_attn": u(ks[2], (1, head_dim), head_dim),
        "wr": u(ks[3], (head_dim, head_dim), head_dim),
        "br": u(ks[4], (1, head_dim), head_dim),
        "wout": u(ks[5], (inner, input_dim), inner),
        "bout": u(ks[6], (1, input_dim), inner),
    }


if __name__ == "__main__":
    key = jax.random.PRNGKey(0)
    # (B, N, D, heads, head_dim) — exercise fold/non-fold, fused-QKV, batch padding.
    configs = [
        (2, 8, 32, 2, 16),   # D == inner -> folded to_r path
        (3, 8, 64, 2, 16),   # D > inner  -> block-diagonal to_r path, non-divisible B (padding)
        (2, 8, 64, 8, 16),   # inner=128  -> fused QKV path (+ folded to_r)
    ]
    for (B, N, D, H, HD) in configs:
        key, kx, kp = jax.random.split(key, 3)
        x = jax.random.normal(kx, (B, N, D), dtype=jnp.float32)
        params = init_params(kp, D, H, HD)

        out = jax.block_until_ready(
            fastformer_forward(x, params, num_heads=H, head_dim=HD))
        ref = fastformer_reference(x, params, num_heads=H, head_dim=HD)

        assert out.shape == (B, N, D)
        max_err = float(jnp.max(jnp.abs(out - ref)))
        # bf16 MXU inputs + approx reciprocal => relaxed tolerance.
        assert jnp.allclose(out, ref, atol=2e-2, rtol=2e-2), (
            f"mismatch vs reference cfg={(B, N, D, H, HD)} (max err {max_err})")

    print("KERNEL_OK")
</pallas_src>

<mosaic_0001>
module attributes {stable_mosaic.version = 11 : i64} {
  func.func @fastformer_kernel(%arg0: i32, %arg1: memref<1x8x32xbf16, #tpu.memory_space<vmem>>, %arg2: memref<32x32xbf16, #tpu.memory_space<vmem>>, %arg3: memref<32x32xbf16, #tpu.memory_space<vmem>>, %arg4: memref<32x32xbf16, #tpu.memory_space<vmem>>, %arg5: memref<32x2xbf16, #tpu.memory_space<vmem>>, %arg6: memref<32x2xbf16, #tpu.memory_space<vmem>>, %arg7: memref<2x32xf32, #tpu.memory_space<vmem>>, %arg8: memref<32x32xbf16, #tpu.memory_space<vmem>>, %arg9: memref<32x32xbf16, #tpu.memory_space<vmem>>, %arg10: memref<1x32xf32, #tpu.memory_space<vmem>>, %arg11: memref<1x8x32xf32, #tpu.memory_space<vmem>>) attributes {dimension_semantics = [#tpu.dimension_semantics<parallel>], iteration_bounds = array<i64: 2>, scalar_prefetch = 0 : i64, scratch_operands = 0 : i64, tpu.core_type = #tpu.core_type<tc>, window_params = [{transform_indices = @transform_0, window_bounds = array<i64: 1, 8, 32>}, {pipeline_mode = #tpu.pipeline_mode<synchronous>, transform_indices = @transform_1, window_bounds = array<i64: 32, 32>}, {pipeline_mode = #tpu.pipeline_mode<synchronous>, transform_indices = @transform_2, window_bounds = array<i64: 32, 32>}, {pipeline_mode = #tpu.pipeline_mode<synchronous>, transform_indices = @transform_3, window_bounds = array<i64: 32, 32>}, {pipeline_mode = #tpu.pipeline_mode<synchronous>, transform_indices = @transform_4, window_bounds = array<i64: 32, 2>}, {pipeline_mode = #tpu.pipeline_mode<synchronous>, transform_indices = @transform_5, window_bounds = array<i64: 32, 2>}, {pipeline_mode = #tpu.pipeline_mode<synchronous>, transform_indices = @transform_6, window_bounds = array<i64: 2, 32>}, {pipeline_mode = #tpu.pipeline_mode<synchronous>, transform_indices = @transform_7, window_bounds = array<i64: 32, 32>}, {pipeline_mode = #tpu.pipeline_mode<synchronous>, transform_indices = @transform_8, window_bounds = array<i64: 32, 32>}, {pipeline_mode = #tpu.pipeline_mode<synchronous>, transform_indices = @transform_9, window_bounds = array<i64: 1, 32>}, {transform_indices = @transform_10, window_bounds = array<i64: 1, 8, 32>}]} {
    %c0 = arith.constant 0 : index
    %c0_0 = arith.constant 0 : index
    %c0_1 = arith.constant 0 : index
    %0 = vector.load %arg1[%c0, %c0_0, %c0_1] : memref<1x8x32xbf16, #tpu.memory_space<vmem>>, vector<1x8x32xbf16>
    %1 = vector.shape_cast %0 : vector<1x8x32xbf16> to vector<8x32xbf16>
    %c0_2 = arith.constant 0 : index
    %c0_3 = arith.constant 0 : index
    %2 = vector.load %arg2[%c0_2, %c0_3] : memref<32x32xbf16, #tpu.memory_space<vmem>>, vector<32x32xbf16>
    %cst = arith.constant dense<0.000000e+00> : vector<8x32xf32>
    %3 = tpu.matmul %1, %2, %cst {dimension_numbers = #tpu.dot_dimension_numbers<[1], [0], [0], [1], [0, 0, 1, 1], [], []>} : vector<8x32xbf16>, vector<32x32xbf16>, vector<8x32xf32> -> vector<8x32xf32>
    %c0_4 = arith.constant 0 : index
    %c0_5 = arith.constant 0 : index
    %4 = vector.load %arg3[%c0_4, %c0_5] : memref<32x32xbf16, #tpu.memory_space<vmem>>, vector<32x32xbf16>
    %cst_6 = arith.constant dense<0.000000e+00> : vector<8x32xf32>
    %5 = tpu.matmul %1, %4, %cst_6 {dimension_numbers = #tpu.dot_dimension_numbers<[1], [0], [0], [1], [0, 0, 1, 1], [], []>} : vector<8x32xbf16>, vector<32x32xbf16>, vector<8x32xf32> -> vector<8x32xf32>
    %c0_7 = arith.constant 0 : index
    %c0_8 = arith.constant 0 : index
    %6 = vector.load %arg4[%c0_7, %c0_8] : memref<32x32xbf16, #tpu.memory_space<vmem>>, vector<32x32xbf16>
    %cst_9 = arith.constant dense<0.000000e+00> : vector<8x32xf32>
    %7 = tpu.matmul %1, %6, %cst_9 {dimension_numbers = #tpu.dot_dimension_numbers<[1], [0], [0], [1], [0, 0, 1, 1], [], []>} : vector<8x32xbf16>, vector<32x32xbf16>, vector<8x32xf32> -> vector<8x32xf32>
    %8 = arith.truncf %3 : vector<8x32xf32> to vector<8x32xbf16>
    %c0_10 = arith.constant 0 : index
    %c0_11 = arith.constant 0 : index
    %9 = vector.load %arg7[%c0_10, %c0_11] : memref<2x32xf32, #tpu.memory_space<vmem>>, vector<2x32xf32>
    %c0_12 = arith.constant 0 : index
    %c0_13 = arith.constant 0 : index
    %10 = vector.load %arg5[%c0_12, %c0_13] : memref<32x2xbf16, #tpu.memory_space<vmem>>, vector<32x2xbf16>
    %cst_14 = arith.constant dense<0.000000e+00> : vector<8x2xf32>
    %11 = tpu.matmul %8, %10, %cst_14 {dimension_numbers = #tpu.dot_dimension_numbers<[1], [0], [0], [1], [0, 0, 1, 1], [], []>} : vector<8x32xbf16>, vector<32x2xbf16>, vector<8x2xf32> -> vector<8x2xf32>
    %12 = vector.shape_cast %11 : vector<8x2xf32> to vector<1x8x2xf32>
    %cst_15 = arith.constant dense<0xFF800000> : vector<1x2xf32>
    %13 = vector.multi_reduction <maximumf>, %12, %cst_15 [1] : vector<1x8x2xf32> to vector<1x2xf32>
    %14 = vector.shape_cast %13 : vector<1x2xf32> to vector<1x1x2xf32>
    %15 = vector.broadcast %14 : vector<1x1x2xf32> to vector<1x8x2xf32>
    %16 = arith.subf %12, %15 : vector<1x8x2xf32>
    %17 = math.exp %16 : vector<1x8x2xf32>
    %cst_16 = arith.constant dense<0.000000e+00> : vector<1x2xf32>
    %18 = vector.multi_reduction <add>, %17, %cst_16 [1] : vector<1x8x2xf32> to vector<1x2xf32>
    %19 = vector.shape_cast %18 : vector<1x2xf32> to vector<1x1x2xf32>
    %20 = tpu.reciprocal %19 {approx = true} : vector<1x1x2xf32> -> vector<1x1x2xf32>
    %21 = vector.broadcast %20 : vector<1x1x2xf32> to vector<1x8x2xf32>
    %22 = arith.mulf %17, %21 : vector<1x8x2xf32>
    %23 = vector.shape_cast %22 : vector<1x8x2xf32> to vector<8x2xf32>
    %cst_17 = arith.constant dense<0.000000e+00> : vector<8x32xf32>
    %24 = tpu.matmul %23, %9, %cst_17 {dimension_numbers = #tpu.dot_dimension_numbers<[1], [0], [0], [1], [0, 0, 1, 1], [], []>} : vector<8x2xf32>, vector<2x32xf32>, vector<8x32xf32> -> vector<8x32xf32>
    %25 = vector.shape_cast %3 : vector<8x32xf32> to vector<1x8x32xf32>
    %26 = vector.shape_cast %24 : vector<8x32xf32> to vector<1x8x32xf32>
    %27 = arith.mulf %26, %25 : vector<1x8x32xf32>
    %cst_18 = arith.constant dense<0.000000e+00> : vector<1x32xf32>
    %28 = vector.multi_reduction <add>, %27, %cst_18 [1] : vector<1x8x32xf32> to vector<1x32xf32>
    %29 = vector.shape_cast %28 : vector<1x32xf32> to vector<1x1x32xf32>
    %30 = arith.truncf %5 : vector<8x32xf32> to vector<8x32xbf16>
    %31 = vector.shape_cast %30 : vector<8x32xbf16> to vector<1x8x32xbf16>
    %32 = arith.truncf %29 : vector<1x1x32xf32> to vector<1x1x32xbf16>
    %33 = vector.broadcast %32 : vector<1x1x32xbf16> to vector<1x8x32xbf16>
    %34 = arith.mulf %31, %33 : vector<1x8x32xbf16>
    %35 = vector.shape_cast %34 : vector<1x8x32xbf16> to vector<8x32xbf16>
    %c0_19 = arith.constant 0 : index
    %c0_20 = arith.constant 0 : index
    %36 = vector.load %arg6[%c0_19, %c0_20] : memref<32x2xbf16, #tpu.memory_space<vmem>>, vector<32x2xbf16>
    %cst_21 = arith.constant dense<0.000000e+00> : vector<8x2xf32>
    %37 = tpu.matmul %35, %36, %cst_21 {dimension_numbers = #tpu.dot_dimension_numbers<[1], [0], [0], [1], [0, 0, 1, 1], [], []>} : vector<8x32xbf16>, vector<32x2xbf16>, vector<8x2xf32> -> vector<8x2xf32>
    %38 = vector.shape_cast %37 : vector<8x2xf32> to vector<1x8x2xf32>
    %cst_22 = arith.constant dense<0xFF800000> : vector<1x2xf32>
    %39 = vector.multi_reduction <maximumf>, %38, %cst_22 [1] : vector<1x8x2xf32> to vector<1x2xf32>
    %40 = vector.shape_cast %39 : vector<1x2xf32> to vector<1x1x2xf32>
    %41 = vector.broadcast %40 : vector<1x1x2xf32> to vector<1x8x2xf32>
    %42 = arith.subf %38, %41 : vector<1x8x2xf32>
    %43 = math.exp %42 : vector<1x8x2xf32>
    %cst_23 = arith.constant dense<0.000000e+00> : vector<1x2xf32>
    %44 = vector.multi_reduction <add>, %43, %cst_23 [1] : vector<1x8x2xf32> to vector<1x2xf32>
    %45 = vector.shape_cast %44 : vector<1x2xf32> to vector<1x1x2xf32>
    %46 = tpu.reciprocal %45 {approx = true} : vector<1x1x2xf32> -> vector<1x1x2xf32>
    %47 = vector.broadcast %46 : vector<1x1x2xf32> to vector<1x8x2xf32>
    %48 = arith.mulf %43, %47 : vector<1x8x2xf32>
    %49 = vector.shape_cast %48 : vector<1x8x2xf32> to vector<8x2xf32>
    %cst_24 = arith.constant dense<0.000000e+00> : vector<8x32xf32>
    %50 = tpu.matmul %49, %9, %cst_24 {dimension_numbers = #tpu.dot_dimension_numbers<[1], [0], [0], [1], [0, 0, 1, 1], [], []>} : vector<8x2xf32>, vector<2x32xf32>, vector<8x32xf32> -> vector<8x32xf32>
    %51 = vector.shape_cast %50 : vector<8x32xf32> to vector<1x8x32xf32>
    %52 = arith.extf %31 : vector<1x8x32xbf16> to vector<1x8x32xf32>
    %53 = arith.mulf %51, %52 : vector<1x8x32xf32>
    %cst_25 = arith.constant dense<0.000000e+00> : vector<1x32xf32>
    %54 = vector.multi_reduction <add>, %53, %cst_25 [1] : vector<1x8x32xf32> to vector<1x32xf32>
    %55 = vector.shape_cast %54 : vector<1x32xf32> to vector<1x1x32xf32>
    %56 = arith.truncf %7 : vector<8x32xf32> to vector<8x32xbf16>
    %57 = vector.shape_cast %56 : vector<8x32xbf16> to vector<1x8x32xbf16>
    %58 = arith.truncf %55 : vector<1x1x32xf32> to vector<1x1x32xbf16>
    %59 = vector.broadcast %58 : vector<1x1x32xbf16> to vector<1x8x32xbf16>
    %60 = arith.mulf %57, %59 : vector<1x8x32xbf16>
    %61 = vector.shape_cast %60 : vector<1x8x32xbf16> to vector<8x32xbf16>
    %c0_26 = arith.constant 0 : index
    %c0_27 = arith.constant 0 : index
    %62 = vector.load %arg8[%c0_26, %c0_27] : memref<32x32xbf16, #tpu.memory_space<vmem>>, vector<32x32xbf16>
    %cst_28 = arith.constant dense<0.000000e+00> : vector<8x32xf32>
    %63 = tpu.matmul %61, %62, %cst_28 {dimension_numbers = #tpu.dot_dimension_numbers<[1], [0], [0], [1], [0, 0, 1, 1], [], []>} : vector<8x32xbf16>, vector<32x32xbf16>, vector<8x32xf32> -> vector<8x32xf32>
    %c0_29 = arith.constant 0 : index
    %c0_30 = arith.constant 0 : index
    %64 = vector.load %arg9[%c0_29, %c0_30] : memref<32x32xbf16, #tpu.memory_space<vmem>>, vector<32x32xbf16>
    %cst_31 = arith.constant dense<0.000000e+00> : vector<8x32xf32>
    %65 = tpu.matmul %8, %64, %cst_31 {dimension_numbers = #tpu.dot_dimension_numbers<[1], [0], [0], [1], [0, 0, 1, 1], [], []>} : vector<8x32xbf16>, vector<32x32xbf16>, vector<8x32xf32> -> vector<8x32xf32>
    %66 = arith.addf %63, %65 : vector<8x32xf32>
    %c0_32 = arith.constant 0 : index
    %c0_33 = arith.constant 0 : index
    %67 = vector.load %arg10[%c0_32, %c0_33] : memref<1x32xf32, #tpu.memory_space<vmem>>, vector<1x32xf32>
    %68 = vector.broadcast %67 : vector<1x32xf32> to vector<8x32xf32>
    %69 = arith.addf %66, %68 : vector<8x32xf32>
    %70 = vector.shape_cast %69 : vector<8x32xf32> to vector<1x8x32xf32>
    %c0_34 = arith.constant 0 : index
    %c0_35 = arith.constant 0 : index
    %c0_36 = arith.constant 0 : index
    %71 = vector.load %arg11[%c0_34, %c0_35, %c0_36] : memref<1x8x32xf32, #tpu.memory_space<vmem>>, vector<1x8x32xf32>
    tpu.vector_store %arg11[%c0_34, %c0_35, %c0_36], %70 {strides = array<i32>} : memref<1x8x32xf32, #tpu.memory_space<vmem>>, vector<1x8x32xf32>,
    return
  }
  func.func @transform_0(%arg0: i32) -> (i32, i32, i32) {
    %c0_i32 = arith.constant 0 : i32
    %c0_i32_0 = arith.constant 0 : i32
    %c0_i32_1 = arith.constant 0 : i32
    return %arg0, %c0_i32, %c0_i32_0 : i32, i32, i32
  }
  func.func @transform_1(%arg0: i32) -> (i32, i32) {
    %c0_i32 = arith.constant 0 : i32
    %c0_i32_0 = arith.constant 0 : i32
    %c0_i32_1 = arith.constant 0 : i32
    return %c0_i32, %c0_i32_0 : i32, i32
  }
  func.func @transform_2(%arg0: i32) -> (i32, i32) {
    %c0_i32 = arith.constant 0 : i32
    %c0_i32_0 = arith.constant 0 : i32
    %c0_i32_1 = arith.constant 0 : i32
    return %c0_i32, %c0_i32_0 : i32, i32
  }
  func.func @transform_3(%arg0: i32) -> (i32, i32) {
    %c0_i32 = arith.constant 0 : i32
    %c0_i32_0 = arith.constant 0 : i32
    %c0_i32_1 = arith.constant 0 : i32
    return %c0_i32, %c0_i32_0 : i32, i32
  }
  func.func @transform_4(%arg0: i32) -> (i32, i32) {
    %c0_i32 = arith.constant 0 : i32
    %c0_i32_0 = arith.constant 0 : i32
    %c0_i32_1 = arith.constant 0 : i32
    return %c0_i32, %c0_i32_0 : i32, i32
  }
  func.func @transform_5(%arg0: i32) -> (i32, i32) {
    %c0_i32 = arith.constant 0 : i32
    %c0_i32_0 = arith.constant 0 : i32
    %c0_i32_1 = arith.constant 0 : i32
    return %c0_i32, %c0_i32_0 : i32, i32
  }
  func.func @transform_6(%arg0: i32) -> (i32, i32) {
    %c0_i32 = arith.constant 0 : i32
    %c0_i32_0 = arith.constant 0 : i32
    %c0_i32_1 = arith.constant 0 : i32
    return %c0_i32, %c0_i32_0 : i32, i32
  }
  func.func @transform_7(%arg0: i32) -> (i32, i32) {
    %c0_i32 = arith.constant 0 : i32
    %c0_i32_0 = arith.constant 0 : i32
    %c0_i32_1 = arith.constant 0 : i32
    return %c0_i32, %c0_i32_0 : i32, i32
  }
  func.func @transform_8(%arg0: i32) -> (i32, i32) {
    %c0_i32 = arith.constant 0 : i32
    %c0_i32_0 = arith.constant 0 : i32
    %c0_i32_1 = arith.constant 0 : i32
    return %c0_i32, %c0_i32_0 : i32, i32
  }
  func.func @transform_9(%arg0: i32) -> (i32, i32) {
    %c0_i32 = arith.constant 0 : i32
    %c0_i32_0 = arith.constant 0 : i32
    %c0_i32_1 = arith.constant 0 : i32
    return %c0_i32, %c0_i32_0 : i32, i32
  }
  func.func @transform_10(%arg0: i32) -> (i32, i32, i32) {
    %c0_i32 = arith.constant 0 : i32
    %c0_i32_0 = arith.constant 0 : i32
    %c0_i32_1 = arith.constant 0 : i32
    return %arg0, %c0_i32, %c0_i32_0 : i32, i32, i32
  }
}

module attributes {stable_mosaic.version = 11 : i64} {
  func.func @fastformer_kernel(%arg0: i32, %arg1: memref<1x8x32xbf16, #tpu.memory_space<vmem>>, %arg2: memref<32x32xbf16, #tpu.memory_space<vmem>>, %arg3: memref<32x32xbf16, #tpu.memory_space<vmem>>, %arg4: memref<32x32xbf16, #tpu.memory_space<vmem>>, %arg5: memref<32x2xbf16, #tpu.memory_space<vmem>>, %arg6: memref<32x2xbf16, #tpu.memory_space<vmem>>, %arg7: memref<2x32xf32, #tpu.memory_space<vmem>>, %arg8: memref<32x32xbf16, #tpu.memory_space<vmem>>, %arg9: memref<32x32xbf16, #tpu.memory_space<vmem>>, %arg10: memref<1x32xf32, #tpu.memory_space<vmem>>, %arg11: memref<1x8x32xf32, #tpu.memory_space<vmem>>) attributes {dimension_semantics = [#tpu.dimension_semantics<parallel>], iteration_bounds = array<i64: 2>, scalar_prefetch = 0 : i64, scratch_operands = 0 : i64, tpu.core_type = #tpu.core_type<tc>, window_params = [{transform_indices = @transform_0, window_bounds = array<i64: 1, 8, 32>}, {pipeline_mode = #tpu.pipeline_mode<synchronous>, transform_indices = @transform_1, window_bounds = array<i64: 32, 32>}, {pipeline_mode = #tpu.pipeline_mode<synchronous>, transform_indices = @transform_2, window_bounds = array<i64: 32, 32>}, {pipeline_mode = #tpu.pipeline_mode<synchronous>, transform_indices = @transform_3, window_bounds = array<i64: 32, 32>}, {pipeline_mode = #tpu.pipeline_mode<synchronous>, transform_indices = @transform_4, window_bounds = array<i64: 32, 2>}, {pipeline_mode = #tpu.pipeline_mode<synchronous>, transform_indices = @transform_5, window_bounds = array<i64: 32, 2>}, {pipeline_mode = #tpu.pipeline_mode<synchronous>, transform_indices = @transform_6, window_bounds = array<i64: 2, 32>}, {pipeline_mode = #tpu.pipeline_mode<synchronous>, transform_indices = @transform_7, window_bounds = array<i64: 32, 32>}, {pipeline_mode = #tpu.pipeline_mode<synchronous>, transform_indices = @transform_8, window_bounds = array<i64: 32, 32>}, {pipeline_mode = #tpu.pipeline_mode<synchronous>, transform_indices = @transform_9, window_bounds = array<i64: 1, 32>}, {transform_indices = @transform_10, window_bounds = array<i64: 1, 8, 32>}]} {
    %c0 = arith.constant 0 : index
    %c0_0 = arith.constant 0 : index
    %c0_1 = arith.constant 0 : index
    %0 = vector.load %arg1[%c0, %c0_0, %c0_1] : memref<1x8x32xbf16, #tpu.memory_space<vmem>>, vector<1x8x32xbf16>
    %1 = vector.shape_cast %0 : vector<1x8x32xbf16> to vector<8x32xbf16>
    %c0_2 = arith.constant 0 : index
    %c0_3 = arith.constant 0 : index
    %2 = vector.load %arg2[%c0_2, %c0_3] : memref<32x32xbf16, #tpu.memory_space<vmem>>, vector<32x32xbf16>
    %cst = arith.constant dense<0.000000e+00> : vector<8x32xf32>
    %3 = tpu.matmul %1, %2, %cst {dimension_numbers = #tpu.dot_dimension_numbers<[1], [0], [0], [1], [0, 0, 1, 1], [], []>} : vector<8x32xbf16>, vector<32x32xbf16>, vector<8x32xf32> -> vector<8x32xf32>
    %c0_4 = arith.constant 0 : index
    %c0_5 = arith.constant 0 : index
    %4 = vector.load %arg3[%c0_4, %c0_5] : memref<32x32xbf16, #tpu.memory_space<vmem>>, vector<32x32xbf16>
    %cst_6 = arith.constant dense<0.000000e+00> : vector<8x32xf32>
    %5 = tpu.matmul %1, %4, %cst_6 {dimension_numbers = #tpu.dot_dimension_numbers<[1], [0], [0], [1], [0, 0, 1, 1], [], []>} : vector<8x32xbf16>, vector<32x32xbf16>, vector<8x32xf32> -> vector<8x32xf32>
    %c0_7 = arith.constant 0 : index
    %c0_8 = arith.constant 0 : index
    %6 = vector.load %arg4[%c0_7, %c0_8] : memref<32x32xbf16, #tpu.memory_space<vmem>>, vector<32x32xbf16>
    %cst_9 = arith.constant dense<0.000000e+00> : vector<8x32xf32>
    %7 = tpu.matmul %1, %6, %cst_9 {dimension_numbers = #tpu.dot_dimension_numbers<[1], [0], [0], [1], [0, 0, 1, 1], [], []>} : vector<8x32xbf16>, vector<32x32xbf16>, vector<8x32xf32> -> vector<8x32xf32>
    %8 = arith.truncf %3 : vector<8x32xf32> to vector<8x32xbf16>
    %c0_10 = arith.constant 0 : index
    %c0_11 = arith.constant 0 : index
    %9 = vector.load %arg7[%c0_10, %c0_11] : memref<2x32xf32, #tpu.memory_space<vmem>>, vector<2x32xf32>
    %c0_12 = arith.constant 0 : index
    %c0_13 = arith.constant 0 : index
    %10 = vector.load %arg5[%c0_12, %c0_13] : memref<32x2xbf16, #tpu.memory_space<vmem>>, vector<32x2xbf16>
    %cst_14 = arith.constant dense<0.000000e+00> : vector<8x2xf32>
    %11 = tpu.matmul %8, %10, %cst_14 {dimension_numbers = #tpu.dot_dimension_numbers<[1], [0], [0], [1], [0, 0, 1, 1], [], []>} : vector<8x32xbf16>, vector<32x2xbf16>, vector<8x2xf32> -> vector<8x2xf32>
    %12 = vector.shape_cast %11 : vector<8x2xf32> to vector<1x8x2xf32>
    %cst_15 = arith.constant dense<0xFF800000> : vector<1x2xf32>
    %13 = vector.multi_reduction <maximumf>, %12, %cst_15 [1] : vector<1x8x2xf32> to vector<1x2xf32>
    %14 = vector.shape_cast %13 : vector<1x2xf32> to vector<1x1x2xf32>
    %15 = vector.broadcast %14 : vector<1x1x2xf32> to vector<1x8x2xf32>
    %16 = arith.subf %12, %15 : vector<1x8x2xf32>
    %17 = math.exp %16 : vector<1x8x2xf32>
    %cst_16 = arith.constant dense<0.000000e+00> : vector<1x2xf32>
    %18 = vector.multi_reduction <add>, %17, %cst_16 [1] : vector<1x8x2xf32> to vector<1x2xf32>
    %19 = vector.shape_cast %18 : vector<1x2xf32> to vector<1x1x2xf32>
    %20 = tpu.reciprocal %19 {approx = true} : vector<1x1x2xf32> -> vector<1x1x2xf32>
    %21 = vector.broadcast %20 : vector<1x1x2xf32> to vector<1x8x2xf32>
    %22 = arith.mulf %17, %21 : vector<1x8x2xf32>
    %23 = vector.shape_cast %22 : vector<1x8x2xf32> to vector<8x2xf32>
    %cst_17 = arith.constant dense<0.000000e+00> : vector<8x32xf32>
    %24 = tpu.matmul %23, %9, %cst_17 {dimension_numbers = #tpu.dot_dimension_numbers<[1], [0], [0], [1], [0, 0, 1, 1], [], []>} : vector<8x2xf32>, vector<2x32xf32>, vector<8x32xf32> -> vector<8x32xf32>
    %25 = vector.shape_cast %3 : vector<8x32xf32> to vector<1x8x32xf32>
    %26 = vector.shape_cast %24 : vector<8x32xf32> to vector<1x8x32xf32>
    %27 = arith.mulf %26, %25 : vector<1x8x32xf32>
    %cst_18 = arith.constant dense<0.000000e+00> : vector<1x32xf32>
    %28 = vector.multi_reduction <add>, %27, %cst_18 [1] : vector<1x8x32xf32> to vector<1x32xf32>
    %29 = vector.shape_cast %28 : vector<1x32xf32> to vector<1x1x32xf32>
    %30 = arith.truncf %5 : vector<8x32xf32> to vector<8x32xbf16>
    %31 = vector.shape_cast %30 : vector<8x32xbf16> to vector<1x8x32xbf16>
    %32 = arith.truncf %29 : vector<1x1x32xf32> to vector<1x1x32xbf16>
    %33 = vector.broadcast %32 : vector<1x1x32xbf16> to vector<1x8x32xbf16>
    %34 = arith.mulf %31, %33 : vector<1x8x32xbf16>
    %35 = vector.shape_cast %34 : vector<1x8x32xbf16> to vector<8x32xbf16>
    %c0_19 = arith.constant 0 : index
    %c0_20 = arith.constant 0 : index
    %36 = vector.load %arg6[%c0_19, %c0_20] : memref<32x2xbf16, #tpu.memory_space<vmem>>, vector<32x2xbf16>
    %cst_21 = arith.constant dense<0.000000e+00> : vector<8x2xf32>
    %37 = tpu.matmul %35, %36, %cst_21 {dimension_numbers = #tpu.dot_dimension_numbers<[1], [0], [0], [1], [0, 0, 1, 1], [], []>} : vector<8x32xbf16>, vector<32x2xbf16>, vector<8x2xf32> -> vector<8x2xf32>
    %38 = vector.shape_cast %37 : vector<8x2xf32> to vector<1x8x2xf32>
    %cst_22 = arith.constant dense<0xFF800000> : vector<1x2xf32>
    %39 = vector.multi_reduction <maximumf>, %38, %cst_22 [1] : vector<1x8x2xf32> to vector<1x2xf32>
    %40 = vector.shape_cast %39 : vector<1x2xf32> to vector<1x1x2xf32>
    %41 = vector.broadcast %40 : vector<1x1x2xf32> to vector<1x8x2xf32>
    %42 = arith.subf %38, %41 : vector<1x8x2xf32>
    %43 = math.exp %42 : vector<1x8x2xf32>
    %cst_23 = arith.constant dense<0.000000e+00> : vector<1x2xf32>
    %44 = vector.multi_reduction <add>, %43, %cst_23 [1] : vector<1x8x2xf32> to vector<1x2xf32>
    %45 = vector.shape_cast %44 : vector<1x2xf32> to vector<1x1x2xf32>
    %46 = tpu.reciprocal %45 {approx = true} : vector<1x1x2xf32> -> vector<1x1x2xf32>
    %47 = vector.broadcast %46 : vector<1x1x2xf32> to vector<1x8x2xf32>
    %48 = arith.mulf %43, %47 : vector<1x8x2xf32>
    %49 = vector.shape_cast %48 : vector<1x8x2xf32> to vector<8x2xf32>
    %cst_24 = arith.constant dense<0.000000e+00> : vector<8x32xf32>
    %50 = tpu.matmul %49, %9, %cst_24 {dimension_numbers = #tpu.dot_dimension_numbers<[1], [0], [0], [1], [0, 0, 1, 1], [], []>} : vector<8x2xf32>, vector<2x32xf32>, vector<8x32xf32> -> vector<8x32xf32>
    %51 = vector.shape_cast %50 : vector<8x32xf32> to vector<1x8x32xf32>
    %52 = arith.extf %31 : vector<1x8x32xbf16> to vector<1x8x32xf32>
    %53 = arith.mulf %51, %52 : vector<1x8x32xf32>
    %cst_25 = arith.constant dense<0.000000e+00> : vector<1x32xf32>
    %54 = vector.multi_reduction <add>, %53, %cst_25 [1] : vector<1x8x32xf32> to vector<1x32xf32>
    %55 = vector.shape_cast %54 : vector<1x32xf32> to vector<1x1x32xf32>
    %56 = arith.truncf %7 : vector<8x32xf32> to vector<8x32xbf16>
    %57 = vector.shape_cast %56 : vector<8x32xbf16> to vector<1x8x32xbf16>
    %58 = arith.truncf %55 : vector<1x1x32xf32> to vector<1x1x32xbf16>
    %59 = vector.broadcast %58 : vector<1x1x32xbf16> to vector<1x8x32xbf16>
    %60 = arith.mulf %57, %59 : vector<1x8x32xbf16>
    %61 = vector.shape_cast %60 : vector<1x8x32xbf16> to vector<8x32xbf16>
    %c0_26 = arith.constant 0 : index
    %c0_27 = arith.constant 0 : index
    %62 = vector.load %arg8[%c0_26, %c0_27] : memref<32x32xbf16, #tpu.memory_space<vmem>>, vector<32x32xbf16>
    %cst_28 = arith.constant dense<0.000000e+00> : vector<8x32xf32>
    %63 = tpu.matmul %61, %62, %cst_28 {dimension_numbers = #tpu.dot_dimension_numbers<[1], [0], [0], [1], [0, 0, 1, 1], [], []>} : vector<8x32xbf16>, vector<32x32xbf16>, vector<8x32xf32> -> vector<8x32xf32>
    %c0_29 = arith.constant 0 : index
    %c0_30 = arith.constant 0 : index
    %64 = vector.load %arg9[%c0_29, %c0_30] : memref<32x32xbf16, #tpu.memory_space<vmem>>, vector<32x32xbf16>
    %cst_31 = arith.constant dense<0.000000e+00> : vector<8x32xf32>
    %65 = tpu.matmul %8, %64, %cst_31 {dimension_numbers = #tpu.dot_dimension_numbers<[1], [0], [0], [1], [0, 0, 1, 1], [], []>} : vector<8x32xbf16>, vector<32x32xbf16>, vector<8x32xf32> -> vector<8x32xf32>
    %66 = arith.addf %63, %65 : vector<8x32xf32>
    %c0_32 = arith.constant 0 : index
    %c0_33 = arith.constant 0 : index
    %67 = vector.load %arg10[%c0_32, %c0_33] : memref<1x32xf32, #tpu.memory_space<vmem>>, vector<1x32xf32>
    %68 = vector.broadcast %67 : vector<1x32xf32> to vector<8x32xf32>
    %69 = arith.addf %66, %68 : vector<8x32xf32>
    %70 = vector.shape_cast %69 : vector<8x32xf32> to vector<1x8x32xf32>
    %c0_34 = arith.constant 0 : index
    %c0_35 = arith.constant 0 : index
    %c0_36 = arith.constant 0 : index
    %71 = vector.load %arg11[%c0_34, %c0_35, %c0_36] : memref<1x8x32xf32, #tpu.memory_space<vmem>>, vector<1x8x32xf32>
    tpu.vector_store %arg11[%c0_34, %c0_35, %c0_36], %70 {strides = array<i32>} : memref<1x8x32xf32, #tpu.memory_space<vmem>>, vector<1x8x32xf32>,
    return
  }
  func.func @transform_0(%arg0: i32) -> (i32, i32, i32) {
    %c0_i32 = arith.constant 0 : i32
    %c0_i32_0 = arith.constant 0 : i32
    %c0_i32_1 = arith.constant 0 : i32
    return %arg0, %c0_i32, %c0_i32_0 : i32, i32, i32
  }
  func.func @transform_1(%arg0: i32) -> (i32, i32) {
    %c0_i32 = arith.constant 0 : i32
    %c0_i32_0 = arith.constant 0 : i32
    %c0_i32_1 = arith.constant 0 : i32
    return %c0_i32, %c0_i32_0 : i32, i32
  }
  func.func @transform_2(%arg0: i32) -> (i32, i32) {
    %c0_i32 = arith.constant 0 : i32
    %c0_i32_0 = arith.constant 0 : i32
    %c0_i32_1 = arith.constant 0 : i32
    return %c0_i32, %c0_i32_0 : i32, i32
  }
  func.func @transform_3(%arg0: i32) -> (i32, i32) {
    %c0_i32 = arith.constant 0 : i32
    %c0_i32_0 = arith.constant 0 : i32
    %c0_i32_1 = arith.constant 0 : i32
    return %c0_i32, %c0_i32_0 : i32, i32
  }
  func.func @transform_4(%arg0: i32) -> (i32, i32) {
    %c0_i32 = arith.constant 0 : i32
    %c0_i32_0 = arith.constant 0 : i32
    %c0_i32_1 = arith.constant 0 : i32
    return %c0_i32, %c0_i32_0 : i32, i32
  }
  func.func @transform_5(%arg0: i32) -> (i32, i32) {
    %c0_i32 = arith.constant 0 : i32
    %c0_i32_0 = arith.constant 0 : i32
    %c0_i32_1 = arith.constant 0 : i32
    return %c0_i32, %c0_i32_0 : i32, i32
  }
  func.func @transform_6(%arg0: i32) -> (i32, i32) {
    %c0_i32 = arith.constant 0 : i32
    %c0_i32_0 = arith.constant 0 : i32
    %c0_i32_1 = arith.constant 0 : i32
    return %c0_i32, %c0_i32_0 : i32, i32
  }
  func.func @transform_7(%arg0: i32) -> (i32, i32) {
    %c0_i32 = arith.constant 0 : i32
    %c0_i32_0 = arith.constant 0 : i32
    %c0_i32_1 = arith.constant 0 : i32
    return %c0_i32, %c0_i32_0 : i32, i32
  }
  func.func @transform_8(%arg0: i32) -> (i32, i32) {
    %c0_i32 = arith.constant 0 : i32
    %c0_i32_0 = arith.constant 0 : i32
    %c0_i32_1 = arith.constant 0 : i32
    return %c0_i32, %c0_i32_0 : i32, i32
  }
  func.func @transform_9(%arg0: i32) -> (i32, i32) {
    %c0_i32 = arith.constant 0 : i32
    %c0_i32_0 = arith.constant 0 : i32
    %c0_i32_1 = arith.constant 0 : i32
    return %c0_i32, %c0_i32_0 : i32, i32
  }
  func.func @transform_10(%arg0: i32) -> (i32, i32, i32) {
    %c0_i32 = arith.constant 0 : i32
    %c0_i32_0 = arith.constant 0 : i32
    %c0_i32_1 = arith.constant 0 : i32
    return %arg0, %c0_i32, %c0_i32_0 : i32, i32, i32
  }
}

</mosaic_0001>

<bundles_post_ra>
// kernel: tpu_custom_call.1
= control target key start
LH: loop header
LB: loop body
LE: loop exit
PB: predicated region body
PF: predicated region fallthrough
CT: control target
= control target key end

     0   :  { %s1934_s0 = inlined_call_operand.hbm [shape: bf16[2,8,32], index: 0, kind: input, shape index: {}]   ;;  %s1935_s1 = inlined_call_operand.vmem [shape: bf16[32,32], index: 1, kind: input, shape index: {}]   ;;  %s1936_s2 = inlined_call_operand.vmem [shape: bf16[32,32], index: 2, kind: input, shape index: {}]   ;;  %s1937_s3 = inlined_call_operand.hbm [shape: bf16[32,32], index: 3, kind: input, shape index: {}]   ;;  %s1938_s4 = inlined_call_operand.vmem [shape: bf16[32,2], index: 4, kind: input, shape index: {}]   ;;  %s1939_s5 = inlined_call_operand.vmem [shape: bf16[32,2], index: 5, kind: input, shape index: {}]   ;;  %s1940_s6 = inlined_call_operand.hbm [shape: f32[2,32], index: 6, kind: input, shape index: {}]   ;;  %s1941_s7 = inlined_call_operand.hbm [shape: bf16[32,32], index: 7, kind: input, shape index: {}]   ;;  %s1942_s8 = inlined_call_operand.vmem [shape: bf16[32,32], index: 8, kind: input, shape index: {}]   ;;  %s1943_s9 = inlined_call_operand.vmem [shape: f32[1,32], index: 9, kind: input, shape index: {}]   ;;  %s1944_s10 = inlined_call_operand.hbm [shape: f32[2,8,32], index: 10, kind: output, shape index: {}]  }
   0x1   :  { %1950 = sst [smem:[#allocation17_spill]] %s1937_s3 }
   0x2   :  { %1951 = sst [smem:[#allocation18_spill]] %s1940_s6 }
   0x3   :  { %1952 = sst [smem:[#allocation19_spill]] %s1941_s7 }
   0x4   :  { %15 = vsyncpa [#allocation3], 0 }
   0x5   :  { %17 = vsyncpa [#allocation3 + $0x1], 0 }
   0x6   :  { %18 = vsyncpa [#allocation6], 0 }
   0x7   :  { %19 = vsyncpa [#allocation9], 0 }
   0x8   :  { %20 = vsyncpa [#allocation4], 0 }
   0x9   :  { %22 = vsyncpa [#allocation4 + $0x1], 0  ;;  %s1642_s13 = smov 0   ;;  %s1644_s14 = smov 0  }
   0xa   :  { %s1646_s15 = smov 0   ;;  %s1648_s16 = smov 0  }
   0xb LB: > { %1953 = sst [smem:[#allocation15_spill]] %s1572_s15  ;;  %s1663_s17 = sadd.s32 4294967295, %s1576_s16   ;;  %s1576_s16 = sphi %s1648_s16, %s1978_s16   ;;  %s1572_s15 = sphi %s1646_s15, %s1975_s15   ;;  %s1568_s14 = sphi %s1644_s14, %s1977_s14   ;;  %s1564_s13 = sphi %s1642_s13, %s1976_s13  }
   0xc   : > { %s1160_s18 = sadd.s32 4294967294, %s1576_s16   ;;  %p48_p0 = scmp.ne.s32.totalorder %s1568_s14, %s1564_s13 }
   0xd   : > { %p1945_p1 = scmp.eq.s32.totalorder %s1663_s17, 0  ;;  %p267_p3 = scmp.eq.s32.totalorder %s1160_s18, 1 }
   0xe   : > { %p1161_p5 = scmp.ge.s32.totalorder %s1576_s16, 1  ;;  %p274_p7 = scmp.lt.s32.totalorder %s1576_s16, 3 }
   0xf   : > { %p1672_p4 = por %p1945_p1, %p48_p0  ;;  %p1677_p6 = por %p267_p3, %p48_p0 }
  0x10   : > { %p1682_p8 = pnand %p1161_p5, %p274_p7  ;;  %s1578_s22 = smov [#allocation5]  }
  0x11   : > { %s1954_s19 = scalar_select %p1672_p4, 1, 0 }
  0x12   : > { %s1955_s20 = scalar_select %p1677_p6, 1, 0 }
  0x13   : > { %s1956_s21 = scalar_select %p1682_p8, 1, 0 }
  0x14   : > { %s292_s23 = sshll.u32 %s1578_s22, 4  ;;  %p1311_p9 = pneg %p1682_p8  ;;  %s293_s23 = int_to_ptr.vmem [resolvable:$true] %s292_s23 }
  0x15   : > { %s1579_s25 = smov [#allocation7]   ;;  %s1580_s27 = smov [#allocation8]  }
  0x16   : > { %p1691_p11 = pnand %p1311_p9, %p1945_p1  ;;  %s312_s26 = sshll.u32 %s1579_s25, 4  ;;  %s313_s26 = int_to_ptr.vmem [resolvable:$true] %s312_s26 }
  0x17   : > { %s322_s28 = sshll.u32 %s1580_s27, 4  ;;  %s1409_s29 = scalar_lea.vmem %s293_s23, 256  ;;  %s323_s28 = int_to_ptr.vmem [resolvable:$true] %s322_s28 }
  0x18   : > { %p1400_p12 = pneg %p1691_p11  ;;  %p1410_p13 = scmp.ne.s32.totalorder %s293_s23, %s1409_s29 }
  0x19   : > { %p1417_p5 = scmp.lt.s32.totalorder %s293_s23, %s293_s23  ;;  %p1418_p7 = scmp.lt.s32.totalorder %s1409_s29, %s1409_s29 }
  0x1a   : > { %p1412_p0 = pnand %p1410_p13, %p1400_p12 }
  0x1b   : > { %p1419_p9 = por %p1418_p7, %p1417_p5 }
  0x1c   : > { %p1413_p3 = pneg %p1412_p0 }
  0x1e   : > { %p1420_p10 = pnand %p1419_p9, %p1413_p3 }
  0x20   : > { %1423 = shalt.err (!%p1420_p10)
}
  0x21   : > { %s1581_s30 = smov 64   ;;  %s1582_s11 = smov 4  }
  0x22   : > { %s1958_s3 = sld [smem:[#allocation17_spill]]  ;;  %s1435_s22 = scalar_lea.vmem %s313_s26, 32 }
  0x23   : > { %p1436_p1 = scmp.ne.s32.totalorder %s313_s26, %s1435_s22  ;;  %p1443_p2 = scmp.lt.s32.totalorder %s313_s26, %s313_s26 }
  0x24   : > { %p1444_p6 = scmp.lt.s32.totalorder %s1435_s22, %s1435_s22 }
  0x25   : > { %p1438_p13 = pnand %p1436_p1, %p1400_p12 }
  0x26   : > { %p1445_p5 = por %p1444_p6, %p1443_p2 }
  0x27   : > { %p1439_p0 = pneg %p1438_p13 }
  0x28   : > { %1314 = dma.hbm_to_vmem [thread:$0]  (!%p1691_p11), %s1958_s3, 256, %s293_s23, [#allocation6], %s1581_s30, %s1581_s30, %s1582_s11  }
  0x29   : > { %p1446_p3 = pnand %p1445_p5, %p1439_p0 }
  0x2b   : > { %1449 = shalt.err (!%p1446_p3)
}
  0x2c   : > { %s1959_s6 = sld [smem:[#allocation18_spill]]  ;;  %s1461_s23 = scalar_lea.vmem %s323_s28, 256 }
  0x2d   : > { %p1462_p10 = scmp.ne.s32.totalorder %s323_s28, %s1461_s23  ;;  %p1469_p9 = scmp.lt.s32.totalorder %s323_s28, %s323_s28 }
  0x2e   : > { %p1470_p13 = scmp.lt.s32.totalorder %s1461_s23, %s1461_s23 }
  0x2f   : > { %p1464_p7 = pnand %p1462_p10, %p1400_p12 }
  0x30   : > { %p1471_p4 = por %p1470_p13, %p1469_p9 }
  0x31   : > { %p1465_p1 = pneg %p1464_p7 }
  0x32   : > { %1317 = dma.hbm_to_vmem [thread:$0]  (!%p1691_p11), %s1959_s6, 32, %s313_s26, [#allocation6]  }
  0x33   : > { %p1472_p2 = pnand %p1471_p4, %p1465_p1 }
  0x35   : > { %1475 = shalt.err (!%p1472_p2)
}
  0x36   : > { %s1960_s7 = sld [smem:[#allocation19_spill]]  ;;  %s1722_s26 = sadd.s32 1, %s1576_s16  }
  0x37   : > { %s32_s18 = ssub.s32 %s1576_s16, %s1722_s26  ;;  %s35_s24 = sadd.s32 1, %s1572_s15 }
  0x38   : > { %p33_p4 = scmp.eq.s32.totalorder %s32_s18, 0  ;;  %p42_p6 = scmp.ne.s32.totalorder %s1572_s15, %s1568_s14 }
  0x39   : > { %p43_p12 = scmp.eq.s32.totalorder %s1576_s16, 0  ;;  %p1332_p0 = scmp.lt.s32.totalorder %s1576_s16, 2 }
  0x3a   : > { %s1732_s22 = scalar_select %p33_p4, %s1572_s15, %s35_s24  }
  0x3b   : > { %p44_p5 = por %p43_p12, %p42_p6  ;;  %p1962_p3 = scmp.eq.s32.totalorder %s1663_s17, 1 }
  0x3c   : > { %1320 = dma.hbm_to_vmem [thread:$0]  (!%p1691_p11), %s1960_s7, 256, %s323_s28, [#allocation9], %s1581_s30, %s1581_s30, %s1582_s11  }
  0x3d   : > { %1961 = sst [smem:[#allocation16_spill]] %s1732_s22  ;;  %p1736_p10 = por %p1962_p3, %p42_p6 }
  0x3e   : > { %s342_s27 = sand.u32 1, %s1572_s15   ;;  %s1167_s23 = sshll.u32 %s1576_s16, 6 }
  0x3f   : > { %s1963_s25 = scalar_select %p1736_p10, 1, 0 }
  0x40   : > { %s1166_s28 = sshll.u32 %s342_s27, 2  ;;  %s1745_s29 = scalar_lea.hbm %s1934_s0, %s1167_s23 }
  0x41   : > { %s346_s12 = scalar_lea.vmem [#allocation2], %s1166_s28  ;;  %p1747_p11 = pnand %p1332_p0, %p44_p5 }
  0x42   : > { %s353_s18 = sshll.u32 %s346_s12, 4  ;;  %s343_s3 = scalar_lea.sflag [#allocation3], %s342_s27  ;;  %s354_s18 = int_to_ptr.vmem [resolvable:$true] %s353_s18 }
  0x43   : > { %s1476_s6 = scalar_lea.hbm %s1745_s29, 64  ;;  %p1478_p1 = pneg %p1747_p11 }
  0x44   : > { %p1477_p7 = scmp.ne.s32.totalorder %s1745_s29, %s1476_s6  ;;  %s1481_s11 = scalar_lea.hbm %s1934_s0, 128 }
  0x45   : > { %p1482_p2 = scmp.lt.s32.totalorder %s1745_s29, %s1934_s0  ;;  %p1483_p4 = scmp.lt.s32.totalorder %s1481_s11, %s1476_s6 }
  0x46   : > { %p1479_p9 = pnand %p1478_p1, %p1477_p7 }
  0x47   : > { %p1484_p6 = por %p1483_p4, %p1482_p2 }
  0x48   : > { %p1480_p13 = pneg %p1479_p9 }
  0x4a   : > { %p1485_p12 = pnand %p1484_p6, %p1480_p13 }
  0x4c   : > { %1488 = shalt.err (!%p1485_p12)
}
  0x4d   : > { %s1489_s12 = scalar_lea.vmem %s354_s18, 64  ;;  %s1583_s27 = smov [#allocation2]  }
  0x4e   : > { %p1490_p0 = scmp.ne.s32.totalorder %s354_s18, %s1489_s12  ;;  %s1494_s22 = sshll.u32 %s1583_s27, 4  ;;  %s1495_s22 = int_to_ptr.vmem [resolvable:$false] %s1494_s22 }
  0x4f   : > { %s1496_s15 = scalar_lea.vmem %s1495_s22, 128  ;;  %p1497_p7 = scmp.lt.s32.totalorder %s354_s18, %s1495_s22 }
  0x50   : > { %p1492_p5 = pnand %p1490_p0, %p1478_p1  ;;  %p1498_p9 = scmp.lt.s32.totalorder %s1496_s15, %s1489_s12 }
  0x52   : > { %p1493_p3 = pneg %p1492_p5  ;;  %p1499_p10 = por %p1498_p9, %p1497_p7 }
  0x54   : > { %p1500_p8 = pnand %p1499_p10, %p1493_p3 }
  0x56   : > { %1503 = shalt.err (!%p1500_p8)
}
  0x57   : > { %1324 = dma.hbm_to_vmem [thread:$0]  (!%p1747_p11), %s1745_s29, 64, %s354_s18, %s343_s3  }
  0x58   : > { %p1965_p13 = scmp.ne.s32.totalorder %s1956_s21, 0 }
  0x59   : > { %s1768_s6 = sand.u32 (!%p1965_p13), 1, %s1568_s14   ;;  %p1966_p1 = scmp.ne.s32.totalorder (!%p1965_p13), %s1954_s19, 0 }
  0x5a   : > { %362 = sbr.rel (%p1965_p13) target bundleno = 1448 (0x5a8), region = 60  ;;  %s1169_s7 = sshll.u32 (!%p1965_p13), %s1768_s6, 2 }
  0x5b   : > { %s365_s23 = scalar_lea.sflag (!%p1965_p13), [#allocation3], %s1768_s6  ;;  %s368_s22 = scalar_lea.vmem (!%p1965_p13), [#allocation2], %s1169_s7 }
  0x5f   : > { %1547 = dma.done.wait (%p1966_p1), %s365_s23, 64  }
  0x60   : > { %1549 = vsyncadd (%p1966_p1), %s365_s23, 4294967232  ;;  %p1967_p8 = scmp.eq.s32.totalorder %s1663_s17, 0 }
  0x62   : > { %1551 = dma.done.wait (%p1967_p8), [#allocation6], 288   ;;  %p1968_p10 = pmov %p1967_p8 }
  0x63   : > { %p1969_p11 = pmov %p1967_p8 }
  0x64   : > { %1553 = vsyncadd (%p1968_p10), [#allocation6], 4294967008 }
  0x65   : > { %1555 = dma.done.wait (%p1969_p11), [#allocation9], 256   ;;  %p1970_p2 = pmov %p1967_p8 }
  0x66   : > { %v1584_v0 = vmov 0.0   ;;  %vm1585_vm0 = vmmov 0   ;;  %v1376_v1 = vld [vmem:[%s1935_s1 + $0x8] sm:$0xff]   ;;  %v1377_v2 = vld [vmem:[%s1935_s1] sm:$0xff]   ;;  %vm435_vm1 = vcmask 261120   ;;  %v1382_v17 = vld [vmem:[#allocation5 + $0x8] sm:$0xff]  }
  0x67   : > { %1557 = vsyncadd (%p1970_p2), [#allocation9], 4294967040  ;;  %1229 = vmatprep.subr.bf16.mxu0 %v1584_v0  ;;  %1233 = vmatprep.mubr.msk.bf16.mxu0 %vm1585_vm0, %v1584_v0  ;;  %v1378_v3 = vld [vmem:[%s1936_s2 + $0x8] sm:$0xff]   ;;  %v1379_v4 = vld [vmem:[%s1936_s2] sm:$0xff]   ;;  %vm675_vm2 = vcmask 1041408   ;;  %vm652_vm3 = vcmask 15360  }
  0x68   : > { %1237 = vmatprep.subr.bf16.mxu1 %v1584_v0  ;;  %1241 = vmatprep.mubr.msk.bf16.mxu1 %vm1585_vm0, %v1584_v0  ;;  %v418_v5 = vld [vmem:[%s368_s22] sm:$0xf]  ;;  %v1380_v6 = vld [vmem:[%s1938_s4 + $0x8] sm:$0xff]   ;;  %v592_v19 = vld [vmem:[#allocation7] sm:$0x3]  ;;  %s1173_s18 = sshll.u32 %s1768_s6, 3 }
  0x69   : > { %1230 = vmatpush3.bf16.msra.mxu0 %v1376_v1  ;;  %1238 = vmatpush3.bf16.msra.mxu1 %v1378_v3  ;;  %v1381_v7 = vld [vmem:[%s1938_s4] sm:$0xff]   ;;  %v1383_v18 = vld [vmem:[#allocation5] sm:$0xff]   ;;  %s1201_s11 = sshll.u32 %s1663_s17, 7  ;;  %s416_s28 = scalar_lea.vmem [#allocation10], %s1173_s18 }
  0x6a   : > { %1231 = vmatprep.subr.bf16.mxu0 %v1584_v0  ;;  %1239 = vmatprep.subr.bf16.mxu1 %v1584_v0  ;;  %v1384_v47 = vld [vmem:[%s1939_s5 + $0x8] sm:$0xff]   ;;  %v1385_v48 = vld [vmem:[%s1939_s5] sm:$0xff]   ;;  %s1061_s12 = sshll.u32 %s416_s28, 4  ;;  %s1890_s23 = scalar_lea.hbm %s1944_s10, %s1201_s11  ;;  %s1892_s12 = int_to_ptr.vmem [resolvable:$true] %s1061_s12 }
  0x6b   : > { %v1386_v61 = vld [vmem:[%s1942_s8 + $0x8] sm:$0xff]   ;;  %v1387_v63 = vld [vmem:[%s1942_s8] sm:$0xff]   ;;  %s1048_s17 = scalar_lea.sflag [#allocation4], %s1768_s6  ;;  %s1504_s22 = scalar_lea.vmem %s1892_s12, 128 }
  0x6c   : > { %p1505_p4 = scmp.ne.s32.totalorder %s1892_s12, %s1504_s22  ;;  %p1971_p6 = scmp.ne.s32.totalorder %s1963_s25, 0 }
  0x6d   : > { %1232 = vmatpush3.bf16.msra.mxu0 %v1377_v2  ;;  %1240 = vmatpush3.bf16.msra.mxu1 %v1379_v4  ;;  %s1586_s3 = smov [#allocation10]  }
  0x6e   : > { %1245 = vmatprep.subr.bf16.mxu0 %v1584_v0  ;;  %1253 = vmatprep.subr.bf16.mxu1 %v1584_v0  ;;  %p1506_p12 = pnand %p1505_p4, %p1971_p6  ;;  %s1508_s15 = sshll.u32 %s1586_s3, 4  ;;  %s1509_s15 = int_to_ptr.vmem [resolvable:$false] %s1508_s15 }
  0x6f   : > { %s1510_s19 = scalar_lea.vmem %s1509_s15, 256  ;;  %p1511_p5 = scmp.lt.s32.totalorder %s1892_s12, %s1509_s15 }
  0x70   : > { %1234 = vmatmul.mubr.msk.bf16.vlgmr.msra.gmra.mxu0 %vm435_vm1, %v418_v5  ;;  %1242 = vmatmul.mubr.msk.bf16.vlgmr.msra.gmra.mxu1 %vm435_vm1, %v418_v5  ;;  %p1507_p0 = pneg %p1506_p12  ;;  %p1512_p3 = scmp.lt.s32.totalorder %s1510_s19, %s1504_s22 }
  0x71   : > { %1249 = vmatprep.mubr.msk.bf16.mxu0 %vm1585_vm0, %v1584_v0  ;;  %1254 = vmatpush3.bf16.msra.mxu1 %v1380_v6 }
  0x72   : > { %1257 = vmatprep.mubr.msk.bf16.mxu1 %vm1585_vm0, %v1584_v0  ;;  %1255 = vmatprep.subr.bf16.mxu1 %v1584_v0  ;;  %p1513_p7 = por %p1512_p3, %p1511_p5 }
  0x73   : > { %1246 = vmatpush3.bf16.msra.mxu0 %v1382_v17 }
  0x74   : > { %1247 = vmatprep.subr.bf16.mxu0 %v1584_v0  ;;  %p1514_p9 = pnand %p1513_p7, %p1507_p0 }
  0x75   : > { %1256 = vmatpush3.bf16.msra.mxu1 %v1381_v7 }
  0x76   : > { %1266 = vmatprep.subr.bf16.mxu1 %v1584_v0 }
  0x77   : > { %1248 = vmatpush3.bf16.msra.mxu0 %v1383_v18 }
  0x78   : > { %1261 = vmatprep.subr.mxu0 %v1584_v0 }
  0x7a   : > { %1250 = vmatmul.mubr.msk.bf16.vlgmr.msra.gmra.mxu0 %vm435_vm1, %v418_v5 }
  0x7b   : > { %1262 = vmatpush3.msk.msra.mxu0 %vm675_vm2, %v592_v19  ;;  %1263 = vmatprep.mubr.msk.f32.mxu0 %vm1585_vm0, %v1584_v0 }
  0x7c   : > { %1274 = vmatprep.subr.mxu0 %v1584_v0 }
 0x130   : > { %v1820_v8 = vpop.f32.mrf.mxu0  ;;  %v1828_v11 = vpop.f32.mrf.mxu1 }
 0x131   : > { %v1824_v9 = vpack.c.bf16 %v1820_v8, %v1820_v8  ;;  %v757_v59 = vpack.c.bf16 %v1828_v11, %v1828_v11 }
 0x132   : > { %v1235_v10 = vpop.f32.mrf.mxu0  ;;  %v1243_v13 = vpop.f32.mrf.mxu1 }
 0x133   : > { %1258 = vmatmul.mubr.msk.bf16.vlgmr.msra.gmra.mxu1 %vm435_vm1, %v1824_v9 }
 0x134   : > { %v476_v12 = vpop.f32.mrf.mxu0  ;;  %1270 = vmatprep.mubr.msk.bf16.mxu1 %vm1585_vm0, %v1584_v0  ;;  %v532_v15 = vpop.f32.mrf.mxu1  ;;  %1267 = vmatpush3.bf16.msra.mxu1 %v1384_v47 }
 0x135   : > { %1268 = vmatprep.subr.bf16.mxu1 %v1584_v0 }
 0x136   : > { %v1236_v14 = vpop.f32.mrf.mxu0  ;;  %v1244_v16 = vpop.f32.mrf.mxu1 }
 0x138   : > { %1269 = vmatpush3.bf16.msra.mxu1 %v1385_v48 }
 0x139   : > { %1279 = vmatprep.subr.bf16.mxu1 %v1584_v0 }
 0x13a   : > { %v1846_v43 = vpop.f32.mrf.mxu0 }
 0x13c   : > { %v1251_v44 = vpop.f32.mrf.mxu0 }
 0x13e   : > { %v588_v45 = vpop.f32.mrf.mxu0 }
 0x13f   : > { %v1199_v45 = vld [vmem:[%s1943_s9] ss:$0 sm:$0xff] }
 0x140   : > { %v1252_v46 = vpop.f32.mrf.mxu0 }
 0x1f3   : > { %v646_v20 = vpop.f32.mrf.mxu1 }
 0x1f4   : > { %v653_v21 = vsel %vm652_vm3, %v646_v20, -inf }
 0x1f5   : > { %v654_v22 = vrot.slane %v653_v21, 4  ;;  %v1259_v23 = vpop.f32.mrf.mxu1 }
 0x1f7   : > { %v655_v24 = vmax.f32 %v653_v21, %v654_v22  ;;  %v649_v25 = vpop.f32.mrf.mxu1 }
 0x1f9   : > { %v656_v26 = vrot.slane %v655_v24, 2  ;;  %v1260_v27 = vpop.f32.mrf.mxu1 }
 0x1fb   : > { %v657_v28 = vmax.f32 %v655_v24, %v656_v26 }
 0x1fd   : > { %v658_v29 = vrot.slane %v657_v28, 1 }
 0x1ff   : > { %v659_v30 = vmax.f32 %v657_v28, %v658_v29  ;;  %v1388_v28 = vld [vmem:[#allocation8 + $0x8] sm:$0xff]   ;;  %v1389_v29 = vld [vmem:[#allocation8] sm:$0xff]  }
 0x201   : > { %v660_v31 = vsub.f32 %v646_v20, %v659_v30  ;;  %v911_v30 = vunpack.c.l.bf16 %v757_v59 }
 0x203   : > { %v661_v32 = vmul.f32 1.442695, %v660_v31 }
 0x205   : > { %1390 = vpow2.f32 %v661_v32 }
 0x212   : > { %v1391_v33 = vpop.eup %1390 }
 0x213   : > { %v663_v34 = vsel %vm652_vm3, %v1391_v33, 0.0 }
 0x214   : > { %v664_v35 = vrot.slane %v663_v34, 4 }
 0x216   : > { %v665_v36 = vadd.f32 %v664_v35, %v663_v34 }
 0x218   : > { %v666_v37 = vrot.slane %v665_v36, 2 }
 0x21a   : > { %v667_v38 = vadd.f32 %v666_v37, %v665_v36 }
 0x21c   : > { %v668_v39 = vrot.slane %v667_v38, 1 }
 0x21e   : > { %v669_v40 = vadd.f32 %v668_v39, %v667_v38 }
 0x220   : > { %1392 = vrcp.f32 %v669_v40 }
 0x22d   : > { %v1393_v41 = vpop.eup %1392 }
 0x22e   : > { %v671_v42 = vmul.f32 %v1393_v41, %v1391_v33  ;;  %v920_v41 = vpack.c.bf16 %v1846_v43, %v1846_v43 }
 0x230   : > { %1264 = vmatmul.mubr.msk.f32.vlgmr.msra.gmra.mxu0 %vm652_vm3, %v671_v42 }
 0x231   : > { %1275 = vmatpush3.msk.msra.mxu0 %vm675_vm2, %v592_v19  ;;  %1276 = vmatprep.mubr.msk.f32.mxu0 %vm1585_vm0, %v1584_v0 }
 0x232   : > { %1287 = vmatprep.subr.bf16.mxu0 %v1584_v0 }
 0x2f0   : > { %v745_v49 = vpop.f32.mrf.mxu0 }
 0x2f1   : > { %v749_v50 = vmul.f32 %v745_v49, %v1820_v8 }
 0x2f2   : > { %v1265_v51 = vpop.f32.mrf.mxu0 }
 0x2f3   : > { %v750_v52 = vsel %vm435_vm1, %v749_v50, 0.0 }
 0x2f4   : > { %v751_v53 = vrot.slane %v750_v52, 4 }
 0x2f6   : > { %v752_v54 = vadd.f32 %v751_v53, %v750_v52 }
 0x2f8   : > { %v753_v55 = vrot.slane %v752_v54, 2 }
 0x2fa   : > { %v754_v56 = vadd.f32 %v753_v55, %v752_v54 }
 0x2fc   : > { %v755_v57 = vrot.slane %v754_v56, 1 }
 0x2fe   : > { %v756_v58 = vadd.f32 %v755_v57, %v754_v56 }
 0x300   : > { %v758_v60 = vpack.c.bf16 %v756_v58, %v756_v58 }
 0x302   : > { %v759_v62 = vmul.bf16 %v758_v60, %v757_v59 }
 0x304   : > { %1271 = vmatmul.mubr.msk.bf16.vlgmr.msra.gmra.mxu1 %vm435_vm1, %v759_v62 }
 0x305   : > { %1280 = vmatpush3.bf16.msra.mxu1 %v1386_v61  ;;  %1283 = vmatprep.mubr.msk.bf16.mxu1 %vm1585_vm0, %v1584_v0 }
 0x306   : > { %1281 = vmatprep.subr.bf16.mxu1 %v1584_v0 }
 0x309   : > { %1282 = vmatpush3.bf16.msra.mxu1 %v1387_v63 }
 0x30c   : > { %1284 = vmatmul.mubr.msk.bf16.vlgmr.msra.gmra.mxu1 %vm435_vm1, %v1824_v9 }
 0x3c4   : > { %v813_v1 = vpop.f32.mrf.mxu1 }
 0x3c5   : > { %v819_v2 = vsel %vm652_vm3, %v813_v1, -inf }
 0x3c6   : > { %v820_v3 = vrot.slane %v819_v2, 4  ;;  %v1272_v4 = vpop.f32.mrf.mxu1 }
 0x3c8   : > { %v821_v5 = vmax.f32 %v819_v2, %v820_v3  ;;  %v816_v6 = vpop.f32.mrf.mxu1 }
 0x3ca   : > { %v822_v7 = vrot.slane %v821_v5, 2  ;;  %v1273_v8 = vpop.f32.mrf.mxu1 }
 0x3cc   : > { %v823_v10 = vmax.f32 %v821_v5, %v822_v7  ;;  %v977_v11 = vpop.f32.mrf.mxu1 }
 0x3ce   : > { %v824_v12 = vrot.slane %v823_v10, 1  ;;  %v1285_v13 = vpop.f32.mrf.mxu1 }
 0x3d0   : > { %v825_v14 = vmax.f32 %v823_v10, %v824_v12  ;;  %v980_v15 = vpop.f32.mrf.mxu1 }
 0x3d2   : > { %v826_v16 = vsub.f32 %v813_v1, %v825_v14  ;;  %v1286_v17 = vpop.f32.mrf.mxu1 }
 0x3d4   : > { %v827_v18 = vmul.f32 1.442695, %v826_v16 }
 0x3d6   : > { %1394 = vpow2.f32 %v827_v18 }
 0x3e3   : > { %v1395_v9 = vpop.eup %1394 }
 0x3e4   : > { %v829_v19 = vsel %vm652_vm3, %v1395_v9, 0.0 }
 0x3e5   : > { %v830_v20 = vrot.slane %v829_v19, 4 }
 0x3e7   : > { %v831_v21 = vadd.f32 %v830_v20, %v829_v19 }
 0x3e9   : > { %v832_v22 = vrot.slane %v831_v21, 2 }
 0x3eb   : > { %v833_v23 = vadd.f32 %v832_v22, %v831_v21 }
 0x3ed   : > { %v834_v24 = vrot.slane %v833_v23, 1 }
 0x3ef   : > { %v835_v25 = vadd.f32 %v834_v24, %v833_v23 }
 0x3f1   : > { %1396 = vrcp.f32 %v835_v25 }
 0x3fe   : > { %v1397_v26 = vpop.eup %1396 }
 0x3ff   : > { %v837_v27 = vmul.f32 %v1397_v26, %v1395_v9 }
 0x401   : > { %1277 = vmatmul.mubr.msk.f32.vlgmr.msra.gmra.mxu0 %vm652_vm3, %v837_v27 }
 0x402   : > { %1291 = vmatprep.mubr.msk.bf16.mxu0 %vm1585_vm0, %v1584_v0  ;;  %1288 = vmatpush3.bf16.msra.mxu0 %v1388_v28 }
 0x403   : > { %1289 = vmatprep.subr.bf16.mxu0 %v1584_v0 }
 0x406   : > { %1290 = vmatpush3.bf16.msra.mxu0 %v1389_v29 }
 0x4c1   : > { %v907_v31 = vpop.f32.mrf.mxu0 }
 0x4c2   : > { %v912_v32 = vmul.f32 %v911_v30, %v907_v31 }
 0x4c3   : > { %v1278_v33 = vpop.f32.mrf.mxu0 }
 0x4c4   : > { %v913_v34 = vsel %vm435_vm1, %v912_v32, 0.0 }
 0x4c5   : > { %v914_v35 = vrot.slane %v913_v34, 4 }
 0x4c7   : > { %v915_v36 = vadd.f32 %v914_v35, %v913_v34 }
 0x4c9   : > { %v916_v37 = vrot.slane %v915_v36, 2 }
 0x4cb   : > { %v917_v38 = vadd.f32 %v916_v37, %v915_v36 }
 0x4cd   : > { %v918_v39 = vrot.slane %v917_v38, 1 }
 0x4cf   : > { %v919_v40 = vadd.f32 %v918_v39, %v917_v38 }
 0x4d1   : > { %v921_v0 = vpack.c.bf16 %v919_v40, %v919_v40 }
 0x4d3   : > { %v922_v42 = vmul.bf16 %v921_v0, %v920_v41 }
 0x4d5   : > { %1292 = vmatmul.mubr.msk.bf16.vlgmr.msra.gmra.mxu0 %vm435_vm1, %v922_v42 }
 0x595   : > { %v1032_v44 = vpop.f32.mrf.mxu0 }
 0x596   : > { %v1033_v46 = vadd.f32 %v1032_v44, %v977_v11 }
 0x597   : > { %v1293_v47 = vpop.f32.mrf.mxu0 }
 0x598   : > { %v1045_v48 = vadd.f32 %v1199_v45, %v1033_v46 }
 0x599   : > { %v1035_v43 = vpop.f32.mrf.mxu0 }
 0x59a   : > { %1046 = vst.msk [vmem:[%s416_s28] sm:$0xff] %vm435_vm1, %v1045_v48 }
 0x59b   : > { %v1294_v49 = vpop.f32.mrf.mxu0 }
 0x59c   : > { %1517 = shalt.err (!%p1514_p9)
}
 0x59d   : > { %s1518_s21 = scalar_lea.hbm %s1890_s23, 128  ;;  %s1522_s18 = scalar_lea.hbm %s1944_s10, 256 }
 0x59e   : > { %p1519_p13 = scmp.ne.s32.totalorder %s1890_s23, %s1518_s21  ;;  %p1523_p10 = scmp.lt.s32.totalorder %s1890_s23, %s1944_s10 }
 0x59f   : > { %p1524_p11 = scmp.lt.s32.totalorder %s1522_s18, %s1518_s21 }
 0x5a0   : > { %p1520_p1 = pnand %p1519_p13, %p1971_p6 }
 0x5a1   : > { %p1525_p2 = por %p1524_p11, %p1523_p10 }
 0x5a2   : > { %p1521_p8 = pneg %p1520_p1 }
 0x5a4   : > { %p1526_p4 = pnand %p1525_p2, %p1521_p8 }
 0x5a6   : > { %1529 = shalt.err (!%p1526_p4)
}
 0x5a7   : > { %1309 = dma.vmem_to_hbm [thread:$0]  (%p1971_p6), %s1892_s12, 128, %s1890_s23, %s1048_s17  }
 0x5a8 PF: > { %s1073_s11 = sand.u32 1, %s1564_s13   ;;  %p1972_p12 = scmp.ne.s32.totalorder %s1955_s20, 0 }
 0x5a9   : > { %p1973_p0 = scmp.ge.s32.totalorder %s1576_s16, 2  ;;  %s1074_s28 = scalar_lea.sflag [#allocation4], %s1073_s11 }
 0x5ab   : > { %p1326_p5 = pnand %p1973_p0, %p1972_p12 }
 0x5ad   : > { %p1327_p3 = pneg %p1326_p5 }
 0x5af   : > { %1559 = dma.done.wait (%p1327_p3), %s1074_s28, 128  }
 0x5b0   : > { %1561 = vsyncadd (%p1327_p3), %s1074_s28, 4294967168  ;;  %s1974_s27 = sld [smem:[#allocation15_spill]]  ;;  %p25_p7 = scmp.ge.s32.totalorder %s1722_s26, 4  }
 0x5b1   : > { %s1975_s15 = sld [smem:[#allocation16_spill]]  ;;  %s1976_s13 = smov %s1568_s14 }
 0x5b2   : > { %s1978_s16 = smov %s1722_s26  ;;  %27 = sbr.rel (!%p25_p7) target bundleno = 11 (0xb), region = 117 }
 0x5b6   : > { %s1977_s14 = smov %s1974_s27 }
 0x5b7   :  { %1079 = vsyncpa [#allocation3], 1 }
 0x5b8   :  { %1081 = vsyncpa [#allocation3 + $0x1], 1 }
 0x5b9   :  { %1082 = vsyncpa [#allocation6], 1 }
 0x5ba   :  { %1083 = vsyncpa [#allocation9], 1 }
 0x5bb   :  { %1084 = vsyncpa [#allocation4], 1 }
 0x5bc   :  { %1086 = vsyncpa [#allocation4 + $0x1], 1 }

// kernel: tpu_custom_call.1
= control target key start
LH: loop header
LB: loop body
LE: loop exit
PB: predicated region body
PF: predicated region fallthrough
CT: control target
= control target key end

     0   :  { %s1934_s0 = inlined_call_operand.hbm [shape: bf16[2,8,32], index: 0, kind: input, shape index: {}]   ;;  %s1935_s1 = inlined_call_operand.vmem [shape: bf16[32,32], index: 1, kind: input, shape index: {}]   ;;  %s1936_s2 = inlined_call_operand.vmem [shape: bf16[32,32], index: 2, kind: input, shape index: {}]   ;;  %s1937_s3 = inlined_call_operand.hbm [shape: bf16[32,32], index: 3, kind: input, shape index: {}]   ;;  %s1938_s4 = inlined_call_operand.vmem [shape: bf16[32,2], index: 4, kind: input, shape index: {}]   ;;  %s1939_s5 = inlined_call_operand.vmem [shape: bf16[32,2], index: 5, kind: input, shape index: {}]   ;;  %s1940_s6 = inlined_call_operand.hbm [shape: f32[2,32], index: 6, kind: input, shape index: {}]   ;;  %s1941_s7 = inlined_call_operand.hbm [shape: bf16[32,32], index: 7, kind: input, shape index: {}]   ;;  %s1942_s8 = inlined_call_operand.vmem [shape: bf16[32,32], index: 8, kind: input, shape index: {}]   ;;  %s1943_s9 = inlined_call_operand.vmem [shape: f32[1,32], index: 9, kind: input, shape index: {}]   ;;  %s1944_s10 = inlined_call_operand.hbm [shape: f32[2,8,32], index: 10, kind: output, shape index: {}]  }
   0x1   :  { %1950 = sst [smem:[#allocation17_spill]] %s1937_s3 }
   0x2   :  { %1951 = sst [smem:[#allocation18_spill]] %s1940_s6 }
   0x3   :  { %1952 = sst [smem:[#allocation19_spill]] %s1941_s7 }
   0x4   :  { %15 = vsyncpa [#allocation3], 0 }
   0x5   :  { %17 = vsyncpa [#allocation3 + $0x1], 0 }
   0x6   :  { %18 = vsyncpa [#allocation6], 0 }
   0x7   :  { %19 = vsyncpa [#allocation9], 0 }
   0x8   :  { %20 = vsyncpa [#allocation4], 0 }
   0x9   :  { %22 = vsyncpa [#allocation4 + $0x1], 0  ;;  %s1642_s13 = smov 0   ;;  %s1644_s14 = smov 0  }
   0xa   :  { %s1646_s15 = smov 0   ;;  %s1648_s16 = smov 0  }
   0xb LB: > { %1953 = sst [smem:[#allocation15_spill]] %s1572_s15  ;;  %s1663_s17 = sadd.s32 4294967295, %s1576_s16   ;;  %s1576_s16 = sphi %s1648_s16, %s1978_s16   ;;  %s1572_s15 = sphi %s1646_s15, %s1975_s15   ;;  %s1568_s14 = sphi %s1644_s14, %s1977_s14   ;;  %s1564_s13 = sphi %s1642_s13, %s1976_s13  }
   0xc   : > { %s1160_s18 = sadd.s32 4294967294, %s1576_s16   ;;  %p48_p0 = scmp.ne.s32.totalorder %s1568_s14, %s1564_s13 }
   0xd   : > { %p1945_p1 = scmp.eq.s32.totalorder %s1663_s17, 0  ;;  %p267_p3 = scmp.eq.s32.totalorder %s1160_s18, 1 }
   0xe   : > { %p1161_p5 = scmp.ge.s32.totalorder %s1576_s16, 1  ;;  %p274_p7 = scmp.lt.s32.totalorder %s1576_s16, 3 }
   0xf   : > { %p1672_p4 = por %p1945_p1, %p48_p0  ;;  %p1677_p6 = por %p267_p3, %p48_p0 }
  0x10   : > { %p1682_p8 = pnand %p1161_p5, %p274_p7  ;;  %s1578_s22 = smov [#allocation5]  }
  0x11   : > { %s1954_s19 = scalar_select %p1672_p4, 1, 0 }
  0x12   : > { %s1955_s20 = scalar_select %p1677_p6, 1, 0 }
  0x13   : > { %s1956_s21 = scalar_select %p1682_p8, 1, 0 }
  0x14   : > { %s292_s23 = sshll.u32 %s1578_s22, 4  ;;  %p1311_p9 = pneg %p1682_p8  ;;  %s293_s23 = int_to_ptr.vmem [resolvable:$true] %s292_s23 }
  0x15   : > { %s1579_s25 = smov [#allocation7]   ;;  %s1580_s27 = smov [#allocation8]  }
  0x16   : > { %p1691_p11 = pnand %p1311_p9, %p1945_p1  ;;  %s312_s26 = sshll.u32 %s1579_s25, 4  ;;  %s313_s26 = int_to_ptr.vmem [resolvable:$true] %s312_s26 }
  0x17   : > { %s322_s28 = sshll.u32 %s1580_s27, 4  ;;  %s1409_s29 = scalar_lea.vmem %s293_s23, 256  ;;  %s323_s28 = int_to_ptr.vmem [resolvable:$true] %s322_s28 }
  0x18   : > { %p1400_p12 = pneg %p1691_p11  ;;  %p1410_p13 = scmp.ne.s32.totalorder %s293_s23, %s1409_s29 }
  0x19   : > { %p1417_p5 = scmp.lt.s32.totalorder %s293_s23, %s293_s23  ;;  %p1418_p7 = scmp.lt.s32.totalorder %s1409_s29, %s1409_s29 }
  0x1a   : > { %p1412_p0 = pnand %p1410_p13, %p1400_p12 }
  0x1b   : > { %p1419_p9 = por %p1418_p7, %p1417_p5 }
  0x1c   : > { %p1413_p3 = pneg %p1412_p0 }
  0x1e   : > { %p1420_p10 = pnand %p1419_p9, %p1413_p3 }
  0x20   : > { %1423 = shalt.err (!%p1420_p10)
}
  0x21   : > { %s1581_s30 = smov 64   ;;  %s1582_s11 = smov 4  }
  0x22   : > { %s1958_s3 = sld [smem:[#allocation17_spill]]  ;;  %s1435_s22 = scalar_lea.vmem %s313_s26, 32 }
  0x23   : > { %p1436_p1 = scmp.ne.s32.totalorder %s313_s26, %s1435_s22  ;;  %p1443_p2 = scmp.lt.s32.totalorder %s313_s26, %s313_s26 }
  0x24   : > { %p1444_p6 = scmp.lt.s32.totalorder %s1435_s22, %s1435_s22 }
  0x25   : > { %p1438_p13 = pnand %p1436_p1, %p1400_p12 }
  0x26   : > { %p1445_p5 = por %p1444_p6, %p1443_p2 }
  0x27   : > { %p1439_p0 = pneg %p1438_p13 }
  0x28   : > { %1314 = dma.hbm_to_vmem [thread:$0]  (!%p1691_p11), %s1958_s3, 256, %s293_s23, [#allocation6], %s1581_s30, %s1581_s30, %s1582_s11  }
  0x29   : > { %p1446_p3 = pnand %p1445_p5, %p1439_p0 }
  0x2b   : > { %1449 = shalt.err (!%p1446_p3)
}
  0x2c   : > { %s1959_s6 = sld [smem:[#allocation18_spill]]  ;;  %s1461_s23 = scalar_lea.vmem %s323_s28, 256 }
  0x2d   : > { %p1462_p10 = scmp.ne.s32.totalorder %s323_s28, %s1461_s23  ;;  %p1469_p9 = scmp.lt.s32.totalorder %s323_s28, %s323_s28 }
  0x2e   : > { %p1470_p13 = scmp.lt.s32.totalorder %s1461_s23, %s1461_s23 }
  0x2f   : > { %p1464_p7 = pnand %p1462_p10, %p1400_p12 }
  0x30   : > { %p1471_p4 = por %p1470_p13, %p1469_p9 }
  0x31   : > { %p1465_p1 = pneg %p1464_p7 }
  0x32   : > { %1317 = dma.hbm_to_vmem [thread:$0]  (!%p1691_p11), %s1959_s6, 32, %s313_s26, [#allocation6]  }
  0x33   : > { %p1472_p2 = pnand %p1471_p4, %p1465_p1 }
  0x35   : > { %1475 = shalt.err (!%p1472_p2)
}
  0x36   : > { %s1960_s7 = sld [smem:[#allocation19_spill]]  ;;  %s1722_s26 = sadd.s32 1, %s1576_s16  }
  0x37   : > { %s32_s18 = ssub.s32 %s1576_s16, %s1722_s26  ;;  %s35_s24 = sadd.s32 1, %s1572_s15 }
  0x38   : > { %p33_p4 = scmp.eq.s32.totalorder %s32_s18, 0  ;;  %p42_p6 = scmp.ne.s32.totalorder %s1572_s15, %s1568_s14 }
  0x39   : > { %p43_p12 = scmp.eq.s32.totalorder %s1576_s16, 0  ;;  %p1332_p0 = scmp.lt.s32.totalorder %s1576_s16, 2 }
  0x3a   : > { %s1732_s22 = scalar_select %p33_p4, %s1572_s15, %s35_s24  }
  0x3b   : > { %p44_p5 = por %p43_p12, %p42_p6  ;;  %p1962_p3 = scmp.eq.s32.totalorder %s1663_s17, 1 }
  0x3c   : > { %1320 = dma.hbm_to_vmem [thread:$0]  (!%p1691_p11), %s1960_s7, 256, %s323_s28, [#allocation9], %s1581_s30, %s1581_s30, %s1582_s11  }
  0x3d   : > { %1961 = sst [smem:[#allocation16_spill]] %s1732_s22  ;;  %p1736_p10 = por %p1962_p3, %p42_p6 }
  0x3e   : > { %s342_s27 = sand.u32 1, %s1572_s15   ;;  %s1167_s23 = sshll.u32 %s1576_s16, 6 }
  0x3f   : > { %s1963_s25 = scalar_select %p1736_p10, 1, 0 }
  0x40   : > { %s1166_s28 = sshll.u32 %s342_s27, 2  ;;  %s1745_s29 = scalar_lea.hbm %s1934_s0, %s1167_s23 }
  0x41   : > { %s346_s12 = scalar_lea.vmem [#allocation2], %s1166_s28  ;;  %p1747_p11 = pnand %p1332_p0, %p44_p5 }
  0x42   : > { %s353_s18 = sshll.u32 %s346_s12, 4  ;;  %s343_s3 = scalar_lea.sflag [#allocation3], %s342_s27  ;;  %s354_s18 = int_to_ptr.vmem [resolvable:$true] %s353_s18 }
  0x43   : > { %s1476_s6 = scalar_lea.hbm %s1745_s29, 64  ;;  %p1478_p1 = pneg %p1747_p11 }
  0x44   : > { %p1477_p7 = scmp.ne.s32.totalorder %s1745_s29, %s1476_s6  ;;  %s1481_s11 = scalar_lea.hbm %s1934_s0, 128 }
  0x45   : > { %p1482_p2 = scmp.lt.s32.totalorder %s1745_s29, %s1934_s0  ;;  %p1483_p4 = scmp.lt.s32.totalorder %s1481_s11, %s1476_s6 }
  0x46   : > { %p1479_p9 = pnand %p1478_p1, %p1477_p7 }
  0x47   : > { %p1484_p6 = por %p1483_p4, %p1482_p2 }
  0x48   : > { %p1480_p13 = pneg %p1479_p9 }
  0x4a   : > { %p1485_p12 = pnand %p1484_p6, %p1480_p13 }
  0x4c   : > { %1488 = shalt.err (!%p1485_p12)
}
  0x4d   : > { %s1489_s12 = scalar_lea.vmem %s354_s18, 64  ;;  %s1583_s27 = smov [#allocation2]  }
  0x4e   : > { %p1490_p0 = scmp.ne.s32.totalorder %s354_s18, %s1489_s12  ;;  %s1494_s22 = sshll.u32 %s1583_s27, 4  ;;  %s1495_s22 = int_to_ptr.vmem [resolvable:$false] %s1494_s22 }
  0x4f   : > { %s1496_s15 = scalar_lea.vmem %s1495_s22, 128  ;;  %p1497_p7 = scmp.lt.s32.totalorder %s354_s18, %s1495_s22 }
  0x50   : > { %p1492_p5 = pnand %p1490_p0, %p1478_p1  ;;  %p1498_p9 = scmp.lt.s32.totalorder %s1496_s15, %s1489_s12 }
  0x52   : > { %p1493_p3 = pneg %p1492_p5  ;;  %p1499_p10 = por %p1498_p9, %p1497_p7 }
  0x54   : > { %p1500_p8 = pnand %p1499_p10, %p1493_p3 }
  0x56   : > { %1503 = shalt.err (!%p1500_p8)
}
  0x57   : > { %1324 = dma.hbm_to_vmem [thread:$0]  (!%p1747_p11), %s1745_s29, 64, %s354_s18, %s343_s3  }
  0x58   : > { %p1965_p13 = scmp.ne.s32.totalorder %s1956_s21, 0 }
  0x59   : > { %s1768_s6 = sand.u32 (!%p1965_p13), 1, %s1568_s14   ;;  %p1966_p1 = scmp.ne.s32.totalorder (!%p1965_p13), %s1954_s19, 0 }
  0x5a   : > { %362 = sbr.rel (%p1965_p13) target bundleno = 1448 (0x5a8), region = 60  ;;  %s1169_s7 = sshll.u32 (!%p1965_p13), %s1768_s6, 2 }
  0x5b   : > { %s365_s23 = scalar_lea.sflag (!%p1965_p13), [#allocation3], %s1768_s6  ;;  %s368_s22 = scalar_lea.vmem (!%p1965_p13), [#allocation2], %s1169_s7 }
  0x5f   : > { %1547 = dma.done.wait (%p1966_p1), %s365_s23, 64  }
  0x60   : > { %1549 = vsyncadd (%p1966_p1), %s365_s23, 4294967232  ;;  %p1967_p8 = scmp.eq.s32.totalorder %s1663_s17, 0 }
  0x62   : > { %1551 = dma.done.wait (%p1967_p8), [#allocation6], 288   ;;  %p1968_p10 = pmov %p1967_p8 }
  0x63   : > { %p1969_p11 = pmov %p1967_p8 }
  0x64   : > { %1553 = vsyncadd (%p1968_p10), [#allocation6], 4294967008 }
  0x65   : > { %1555 = dma.done.wait (%p1969_p11), [#allocation9], 256   ;;  %p1970_p2 = pmov %p1967_p8 }
  0x66   : > { %v1584_v0 = vmov 0.0   ;;  %vm1585_vm0 = vmmov 0   ;;  %v1376_v1 = vld [vmem:[%s1935_s1 + $0x8] sm:$0xff]   ;;  %v1377_v2 = vld [vmem:[%s1935_s1] sm:$0xff]   ;;  %vm435_vm1 = vcmask 261120   ;;  %v1382_v17 = vld [vmem:[#allocation5 + $0x8] sm:$0xff]  }
  0x67   : > { %1557 = vsyncadd (%p1970_p2), [#allocation9], 4294967040  ;;  %1229 = vmatprep.subr.bf16.mxu0 %v1584_v0  ;;  %1233 = vmatprep.mubr.msk.bf16.mxu0 %vm1585_vm0, %v1584_v0  ;;  %v1378_v3 = vld [vmem:[%s1936_s2 + $0x8] sm:$0xff]   ;;  %v1379_v4 = vld [vmem:[%s1936_s2] sm:$0xff]   ;;  %vm675_vm2 = vcmask 1041408   ;;  %vm652_vm3 = vcmask 15360  }
  0x68   : > { %1237 = vmatprep.subr.bf16.mxu1 %v1584_v0  ;;  %1241 = vmatprep.mubr.msk.bf16.mxu1 %vm1585_vm0, %v1584_v0  ;;  %v418_v5 = vld [vmem:[%s368_s22] sm:$0xf]  ;;  %v1380_v6 = vld [vmem:[%s1938_s4 + $0x8] sm:$0xff]   ;;  %v592_v19 = vld [vmem:[#allocation7] sm:$0x3]  ;;  %s1173_s18 = sshll.u32 %s1768_s6, 3 }
  0x69   : > { %1230 = vmatpush3.bf16.msra.mxu0 %v1376_v1  ;;  %1238 = vmatpush3.bf16.msra.mxu1 %v1378_v3  ;;  %v1381_v7 = vld [vmem:[%s1938_s4] sm:$0xff]   ;;  %v1383_v18 = vld [vmem:[#allocation5] sm:$0xff]   ;;  %s1201_s11 = sshll.u32 %s1663_s17, 7  ;;  %s416_s28 = scalar_lea.vmem [#allocation10], %s1173_s18 }
  0x6a   : > { %1231 = vmatprep.subr.bf16.mxu0 %v1584_v0  ;;  %1239 = vmatprep.subr.bf16.mxu1 %v1584_v0  ;;  %v1384_v47 = vld [vmem:[%s1939_s5 + $0x8] sm:$0xff]   ;;  %v1385_v48 = vld [vmem:[%s1939_s5] sm:$0xff]   ;;  %s1061_s12 = sshll.u32 %s416_s28, 4  ;;  %s1890_s23 = scalar_lea.hbm %s1944_s10, %s1201_s11  ;;  %s1892_s12 = int_to_ptr.vmem [resolvable:$true] %s1061_s12 }
  0x6b   : > { %v1386_v61 = vld [vmem:[%s1942_s8 + $0x8] sm:$0xff]   ;;  %v1387_v63 = vld [vmem:[%s1942_s8] sm:$0xff]   ;;  %s1048_s17 = scalar_lea.sflag [#allocation4], %s1768_s6  ;;  %s1504_s22 = scalar_lea.vmem %s1892_s12, 128 }
  0x6c   : > { %p1505_p4 = scmp.ne.s32.totalorder %s1892_s12, %s1504_s22  ;;  %p1971_p6 = scmp.ne.s32.totalorder %s1963_s25, 0 }
  0x6d   : > { %1232 = vmatpush3.bf16.msra.mxu0 %v1377_v2  ;;  %1240 = vmatpush3.bf16.msra.mxu1 %v1379_v4  ;;  %s1586_s3 = smov [#allocation10]  }
  0x6e   : > { %1245 = vmatprep.subr.bf16.mxu0 %v1584_v0  ;;  %1253 = vmatprep.subr.bf16.mxu1 %v1584_v0  ;;  %p1506_p12 = pnand %p1505_p4, %p1971_p6  ;;  %s1508_s15 = sshll.u32 %s1586_s3, 4  ;;  %s1509_s15 = int_to_ptr.vmem [resolvable:$false] %s1508_s15 }
  0x6f   : > { %s1510_s19 = scalar_lea.vmem %s1509_s15, 256  ;;  %p1511_p5 = scmp.lt.s32.totalorder %s1892_s12, %s1509_s15 }
  0x70   : > { %1234 = vmatmul.mubr.msk.bf16.vlgmr.msra.gmra.mxu0 %vm435_vm1, %v418_v5  ;;  %1242 = vmatmul.mubr.msk.bf16.vlgmr.msra.gmra.mxu1 %vm435_vm1, %v418_v5  ;;  %p1507_p0 = pneg %p1506_p12  ;;  %p1512_p3 = scmp.lt.s32.totalorder %s1510_s19, %s1504_s22 }
  0x71   : > { %1249 = vmatprep.mubr.msk.bf16.mxu0 %vm1585_vm0, %v1584_v0  ;;  %1254 = vmatpush3.bf16.msra.mxu1 %v1380_v6 }
  0x72   : > { %1257 = vmatprep.mubr.msk.bf16.mxu1 %vm1585_vm0, %v1584_v0  ;;  %1255 = vmatprep.subr.bf16.mxu1 %v1584_v0  ;;  %p1513_p7 = por %p1512_p3, %p1511_p5 }
  0x73   : > { %1246 = vmatpush3.bf16.msra.mxu0 %v1382_v17 }
  0x74   : > { %1247 = vmatprep.subr.bf16.mxu0 %v1584_v0  ;;  %p1514_p9 = pnand %p1513_p7, %p1507_p0 }
  0x75   : > { %1256 = vmatpush3.bf16.msra.mxu1 %v1381_v7 }
  0x76   : > { %1266 = vmatprep.subr.bf16.mxu1 %v1584_v0 }
  0x77   : > { %1248 = vmatpush3.bf16.msra.mxu0 %v1383_v18 }
  0x78   : > { %1261 = vmatprep.subr.mxu0 %v1584_v0 }
  0x7a   : > { %1250 = vmatmul.mubr.msk.bf16.vlgmr.msra.gmra.mxu0 %vm435_vm1, %v418_v5 }
  0x7b   : > { %1262 = vmatpush3.msk.msra.mxu0 %vm675_vm2, %v592_v19  ;;  %1263 = vmatprep.mubr.msk.f32.mxu0 %vm1585_vm0, %v1584_v0 }
  0x7c   : > { %1274 = vmatprep.subr.mxu0 %v1584_v0 }
 0x130   : > { %v1820_v8 = vpop.f32.mrf.mxu0  ;;  %v1828_v11 = vpop.f32.mrf.mxu1 }
 0x131   : > { %v1824_v9 = vpack.c.bf16 %v1820_v8, %v1820_v8  ;;  %v757_v59 = vpack.c.bf16 %v1828_v11, %v1828_v11 }
 0x132   : > { %v1235_v10 = vpop.f32.mrf.mxu0  ;;  %v1243_v13 = vpop.f32.mrf.mxu1 }
 0x133   : > { %1258 = vmatmul.mubr.msk.bf16.vlgmr.msra.gmra.mxu1 %vm435_vm1, %v1824_v9 }
 0x134   : > { %v476_v12 = vpop.f32.mrf.mxu0  ;;  %1270 = vmatprep.mubr.msk.bf16.mxu1 %vm1585_vm0, %v1584_v0  ;;  %v532_v15 = vpop.f32.mrf.mxu1  ;;  %1267 = vmatpush3.bf16.msra.mxu1 %v1384_v47 }
 0x135   : > { %1268 = vmatprep.subr.bf16.mxu1 %v1584_v0 }
 0x136   : > { %v1236_v14 = vpop.f32.mrf.mxu0  ;;  %v1244_v16 = vpop.f32.mrf.mxu1 }
 0x138   : > { %1269 = vmatpush3.bf16.msra.mxu1 %v1385_v48 }
 0x139   : > { %1279 = vmatprep.subr.bf16.mxu1 %v1584_v0 }
 0x13a   : > { %v1846_v43 = vpop.f32.mrf.mxu0 }
 0x13c   : > { %v1251_v44 = vpop.f32.mrf.mxu0 }
 0x13e   : > { %v588_v45 = vpop.f32.mrf.mxu0 }
 0x13f   : > { %v1199_v45 = vld [vmem:[%s1943_s9] ss:$0 sm:$0xff] }
 0x140   : > { %v1252_v46 = vpop.f32.mrf.mxu0 }
 0x1f3   : > { %v646_v20 = vpop.f32.mrf.mxu1 }
 0x1f4   : > { %v653_v21 = vsel %vm652_vm3, %v646_v20, -inf }
 0x1f5   : > { %v654_v22 = vrot.slane %v653_v21, 4  ;;  %v1259_v23 = vpop.f32.mrf.mxu1 }
 0x1f7   : > { %v655_v24 = vmax.f32 %v653_v21, %v654_v22  ;;  %v649_v25 = vpop.f32.mrf.mxu1 }
 0x1f9   : > { %v656_v26 = vrot.slane %v655_v24, 2  ;;  %v1260_v27 = vpop.f32.mrf.mxu1 }
 0x1fb   : > { %v657_v28 = vmax.f32 %v655_v24, %v656_v26 }
 0x1fd   : > { %v658_v29 = vrot.slane %v657_v28, 1 }
 0x1ff   : > { %v659_v30 = vmax.f32 %v657_v28, %v658_v29  ;;  %v1388_v28 = vld [vmem:[#allocation8 + $0x8] sm:$0xff]   ;;  %v1389_v29 = vld [vmem:[#allocation8] sm:$0xff]  }
 0x201   : > { %v660_v31 = vsub.f32 %v646_v20, %v659_v30  ;;  %v911_v30 = vunpack.c.l.bf16 %v757_v59 }
 0x203   : > { %v661_v32 = vmul.f32 1.442695, %v660_v31 }
 0x205   : > { %1390 = vpow2.f32 %v661_v32 }
 0x212   : > { %v1391_v33 = vpop.eup %1390 }
 0x213   : > { %v663_v34 = vsel %vm652_vm3, %v1391_v33, 0.0 }
 0x214   : > { %v664_v35 = vrot.slane %v663_v34, 4 }
 0x216   : > { %v665_v36 = vadd.f32 %v664_v35, %v663_v34 }
 0x218   : > { %v666_v37 = vrot.slane %v665_v36, 2 }
 0x21a   : > { %v667_v38 = vadd.f32 %v666_v37, %v665_v36 }
 0x21c   : > { %v668_v39 = vrot.slane %v667_v38, 1 }
 0x21e   : > { %v669_v40 = vadd.f32 %v668_v39, %v667_v38 }
 0x220   : > { %1392 = vrcp.f32 %v669_v40 }
 0x22d   : > { %v1393_v41 = vpop.eup %1392 }
 0x22e   : > { %v671_v42 = vmul.f32 %v1393_v41, %v1391_v33  ;;  %v920_v41 = vpack.c.bf16 %v1846_v43, %v1846_v43 }
 0x230   : > { %1264 = vmatmul.mubr.msk.f32.vlgmr.msra.gmra.mxu0 %vm652_vm3, %v671_v42 }
 0x231   : > { %1275 = vmatpush3.msk.msra.mxu0 %vm675_vm2, %v592_v19  ;;  %1276 = vmatprep.mubr.msk.f32.mxu0 %vm1585_vm0, %v1584_v0 }
 0x232   : > { %1287 = vmatprep.subr.bf16.mxu0 %v1584_v0 }
 0x2f0   : > { %v745_v49 = vpop.f32.mrf.mxu0 }
 0x2f1   : > { %v749_v50 = vmul.f32 %v745_v49, %v1820_v8 }
 0x2f2   : > { %v1265_v51 = vpop.f32.mrf.mxu0 }
 0x2f3   : > { %v750_v52 = vsel %vm435_vm1, %v749_v50, 0.0 }
 0x2f4   : > { %v751_v53 = vrot.slane %v750_v52, 4 }
 0x2f6   : > { %v752_v54 = vadd.f32 %v751_v53, %v750_v52 }
 0x2f8   : > { %v753_v55 = vrot.slane %v752_v54, 2 }
 0x2fa   : > { %v754_v56 = vadd.f32 %v753_v55, %v752_v54 }
 0x2fc   : > { %v755_v57 = vrot.slane %v754_v56, 1 }
 0x2fe   : > { %v756_v58 = vadd.f32 %v755_v57, %v754_v56 }
 0x300   : > { %v758_v60 = vpack.c.bf16 %v756_v58, %v756_v58 }
 0x302   : > { %v759_v62 = vmul.bf16 %v758_v60, %v757_v59 }
 0x304   : > { %1271 = vmatmul.mubr.msk.bf16.vlgmr.msra.gmra.mxu1 %vm435_vm1, %v759_v62 }
 0x305   : > { %1280 = vmatpush3.bf16.msra.mxu1 %v1386_v61  ;;  %1283 = vmatprep.mubr.msk.bf16.mxu1 %vm1585_vm0, %v1584_v0 }
 0x306   : > { %1281 = vmatprep.subr.bf16.mxu1 %v1584_v0 }
 0x309   : > { %1282 = vmatpush3.bf16.msra.mxu1 %v1387_v63 }
 0x30c   : > { %1284 = vmatmul.mubr.msk.bf16.vlgmr.msra.gmra.mxu1 %vm435_vm1, %v1824_v9 }
 0x3c4   : > { %v813_v1 = vpop.f32.mrf.mxu1 }
 0x3c5   : > { %v819_v2 = vsel %vm652_vm3, %v813_v1, -inf }
 0x3c6   : > { %v820_v3 = vrot.slane %v819_v2, 4  ;;  %v1272_v4 = vpop.f32.mrf.mxu1 }
 0x3c8   : > { %v821_v5 = vmax.f32 %v819_v2, %v820_v3  ;;  %v816_v6 = vpop.f32.mrf.mxu1 }
 0x3ca   : > { %v822_v7 = vrot.slane %v821_v5, 2  ;;  %v1273_v8 = vpop.f32.mrf.mxu1 }
 0x3cc   : > { %v823_v10 = vmax.f32 %v821_v5, %v822_v7  ;;  %v977_v11 = vpop.f32.mrf.mxu1 }
 0x3ce   : > { %v824_v12 = vrot.slane %v823_v10, 1  ;;  %v1285_v13 = vpop.f32.mrf.mxu1 }
 0x3d0   : > { %v825_v14 = vmax.f32 %v823_v10, %v824_v12  ;;  %v980_v15 = vpop.f32.mrf.mxu1 }
 0x3d2   : > { %v826_v16 = vsub.f32 %v813_v1, %v825_v14  ;;  %v1286_v17 = vpop.f32.mrf.mxu1 }
 0x3d4   : > { %v827_v18 = vmul.f32 1.442695, %v826_v16 }
 0x3d6   : > { %1394 = vpow2.f32 %v827_v18 }
 0x3e3   : > { %v1395_v9 = vpop.eup %1394 }
 0x3e4   : > { %v829_v19 = vsel %vm652_vm3, %v1395_v9, 0.0 }
 0x3e5   : > { %v830_v20 = vrot.slane %v829_v19, 4 }
 0x3e7   : > { %v831_v21 = vadd.f32 %v830_v20, %v829_v19 }
 0x3e9   : > { %v832_v22 = vrot.slane %v831_v21, 2 }
 0x3eb   : > { %v833_v23 = vadd.f32 %v832_v22, %v831_v21 }
 0x3ed   : > { %v834_v24 = vrot.slane %v833_v23, 1 }
 0x3ef   : > { %v835_v25 = vadd.f32 %v834_v24, %v833_v23 }
 0x3f1   : > { %1396 = vrcp.f32 %v835_v25 }
 0x3fe   : > { %v1397_v26 = vpop.eup %1396 }
 0x3ff   : > { %v837_v27 = vmul.f32 %v1397_v26, %v1395_v9 }
 0x401   : > { %1277 = vmatmul.mubr.msk.f32.vlgmr.msra.gmra.mxu0 %vm652_vm3, %v837_v27 }
 0x402   : > { %1291 = vmatprep.mubr.msk.bf16.mxu0 %vm1585_vm0, %v1584_v0  ;;  %1288 = vmatpush3.bf16.msra.mxu0 %v1388_v28 }
 0x403   : > { %1289 = vmatprep.subr.bf16.mxu0 %v1584_v0 }
 0x406   : > { %1290 = vmatpush3.bf16.msra.mxu0 %v1389_v29 }
 0x4c1   : > { %v907_v31 = vpop.f32.mrf.mxu0 }
 0x4c2   : > { %v912_v32 = vmul.f32 %v911_v30, %v907_v31 }
 0x4c3   : > { %v1278_v33 = vpop.f32.mrf.mxu0 }
 0x4c4   : > { %v913_v34 = vsel %vm435_vm1, %v912_v32, 0.0 }
 0x4c5   : > { %v914_v35 = vrot.slane %v913_v34, 4 }
 0x4c7   : > { %v915_v36 = vadd.f32 %v914_v35, %v913_v34 }
 0x4c9   : > { %v916_v37 = vrot.slane %v915_v36, 2 }
 0x4cb   : > { %v917_v38 = vadd.f32 %v916_v37, %v915_v36 }
 0x4cd   : > { %v918_v39 = vrot.slane %v917_v38, 1 }
 0x4cf   : > { %v919_v40 = vadd.f32 %v918_v39, %v917_v38 }
 0x4d1   : > { %v921_v0 = vpack.c.bf16 %v919_v40, %v919_v40 }
 0x4d3   : > { %v922_v42 = vmul.bf16 %v921_v0, %v920_v41 }
 0x4d5   : > { %1292 = vmatmul.mubr.msk.bf16.vlgmr.msra.gmra.mxu0 %vm435_vm1, %v922_v42 }
 0x595   : > { %v1032_v44 = vpop.f32.mrf.mxu0 }
 0x596   : > { %v1033_v46 = vadd.f32 %v1032_v44, %v977_v11 }
 0x597   : > { %v1293_v47 = vpop.f32.mrf.mxu0 }
 0x598   : > { %v1045_v48 = vadd.f32 %v1199_v45, %v1033_v46 }
 0x599   : > { %v1035_v43 = vpop.f32.mrf.mxu0 }
 0x59a   : > { %1046 = vst.msk [vmem:[%s416_s28] sm:$0xff] %vm435_vm1, %v1045_v48 }
 0x59b   : > { %v1294_v49 = vpop.f32.mrf.mxu0 }
 0x59c   : > { %1517 = shalt.err (!%p1514_p9)
}
 0x59d   : > { %s1518_s21 = scalar_lea.hbm %s1890_s23, 128  ;;  %s1522_s18 = scalar_lea.hbm %s1944_s10, 256 }
 0x59e   : > { %p1519_p13 = scmp.ne.s32.totalorder %s1890_s23, %s1518_s21  ;;  %p1523_p10 = scmp.lt.s32.totalorder %s1890_s23, %s1944_s10 }
 0x59f   : > { %p1524_p11 = scmp.lt.s32.totalorder %s1522_s18, %s1518_s21 }
 0x5a0   : > { %p1520_p1 = pnand %p1519_p13, %p1971_p6 }
 0x5a1   : > { %p1525_p2 = por %p1524_p11, %p1523_p10 }
 0x5a2   : > { %p1521_p8 = pneg %p1520_p1 }
 0x5a4   : > { %p1526_p4 = pnand %p1525_p2, %p1521_p8 }
 0x5a6   : > { %1529 = shalt.err (!%p1526_p4)
}
 0x5a7   : > { %1309 = dma.vmem_to_hbm [thread:$0]  (%p1971_p6), %s1892_s12, 128, %s1890_s23, %s1048_s17  }
 0x5a8 PF: > { %s1073_s11 = sand.u32 1, %s1564_s13   ;;  %p1972_p12 = scmp.ne.s32.totalorder %s1955_s20, 0 }
 0x5a9   : > { %p1973_p0 = scmp.ge.s32.totalorder %s1576_s16, 2  ;;  %s1074_s28 = scalar_lea.sflag [#allocation4], %s1073_s11 }
 0x5ab   : > { %p1326_p5 = pnand %p1973_p0, %p1972_p12 }
 0x5ad   : > { %p1327_p3 = pneg %p1326_p5 }
 0x5af   : > { %1559 = dma.done.wait (%p1327_p3), %s1074_s28, 128  }
 0x5b0   : > { %1561 = vsyncadd (%p1327_p3), %s1074_s28, 4294967168  ;;  %s1974_s27 = sld [smem:[#allocation15_spill]]  ;;  %p25_p7 = scmp.ge.s32.totalorder %s1722_s26, 4  }
 0x5b1   : > { %s1975_s15 = sld [smem:[#allocation16_spill]]  ;;  %s1976_s13 = smov %s1568_s14 }
 0x5b2   : > { %s1978_s16 = smov %s1722_s26  ;;  %27 = sbr.rel (!%p25_p7) target bundleno = 11 (0xb), region = 117 }
 0x5b6   : > { %s1977_s14 = smov %s1974_s27 }
 0x5b7   :  { %1079 = vsyncpa [#allocation3], 1 }
 0x5b8   :  { %1081 = vsyncpa [#allocation3 + $0x1], 1 }
 0x5b9   :  { %1082 = vsyncpa [#allocation6], 1 }
 0x5ba   :  { %1083 = vsyncpa [#allocation9], 1 }
 0x5bb   :  { %1084 = vsyncpa [#allocation4], 1 }
 0x5bc   :  { %1086 = vsyncpa [#allocation4 + $0x1], 1 }

</bundles_post_ra>
